<compile_context>
chip_gen: v6e
topology: v6e:2x2x1
jax: 0.10.0
libtpu: 0.0.40
codegen_flags: <defaults>
</compile_context>

<pallas_src>
import functools

import jax
import jax.numpy as jnp
from jax import lax
from jax.experimental import pallas as pl
from jax.experimental.pallas import tpu as pltpu

EPS = 1e-5  # nn.GroupNorm default eps


def _vmem_limit_bytes():
    cap = 128 * 1024 * 1024
    try:
        info = pltpu.get_tpu_info()
        cap = int(getattr(info, "vmem_capacity_bytes", cap))
    except Exception:
        pass
    # ~75% of physical VMEM (v5e/v6e: ~96 MiB, v7x: ~48 MiB), capped for safety.
    return min((cap * 3) // 4, 100 * 1024 * 1024)


def _pick_batch_block(B, T, target_m=256):
    """Largest divisor of B with Bb*T <= target_m; prefer >=2 grid steps if M stays >=128."""
    divisors = [d for d in range(1, B + 1) if B % d == 0]
    candidates = [d for d in divisors if d * T <= max(target_m, T)]
    bb = max(candidates) if candidates else 1
    if B // bb == 1:
        for d in reversed(divisors):
            if d < bb and d * T >= 128:
                bb = d
                break
    return bb


def _block_kernel(x_ref, sb_ref, w1_ref, w2_ref, *rest,
                  K, T, Bb, C_in, C_out, cpg, has_res, mm_dtype, approx_recip):
    if has_res:
        wres_ref, vec_ref, agc_ref, o_ref = rest
    else:
        vec_ref, agc_ref, o_ref = rest

    M = Bb * T
    pad = K // 2

    x32 = x_ref[...].reshape(M, C_in)          # (M, C_in) f32 (kept f32 for residual)
    vec = vec_ref[...]                         # (8, C_out) f32 packed per-channel vectors
    agc = agc_ref[...]                         # (G, C_out) one-hot group->channel map
    sb = sb_ref[...]                           # (Bb, 2, C_out) f32 FiLM scale / bias

    b1, g1w, g1b = vec[0:1], vec[1:2], vec[2:3]
    b2, g2w, g2b = vec[3:4], vec[4:5], vec[5:6]
    bres = vec[6:7]

    # Hoisted segment-boundary masks (shared by conv1 and conv2).
    rw = lax.broadcasted_iota(jnp.int32, (M, 1), 0) % T        # row index within a T-segment
    tap_mask = {}
    for k in range(K):
        s = k - pad
        if s != 0:
            tap_mask[s] = (rw >= -s) & (rw <= (T - 1 - s))

    def conv_same(h32, w_flat_ref, bias):
        # out[t] = sum_k h[t + k - pad] @ w[k]; built as one matmul with LHS (M, K*C).
        parts = []
        for k in range(K):
            s = k - pad
            if s == 0:
                parts.append(h32)
            else:
                shifted = pltpu.roll(h32, (-s) % M, axis=0)     # shifted[t] = h[t + s]
                parts.append(jnp.where(tap_mask[s], shifted, 0.0))
        lhs = parts[0] if K == 1 else jnp.concatenate(parts, axis=-1)   # (M, K*C)
        lhs = lhs.astype(mm_dtype)
        return jnp.dot(lhs, w_flat_ref[...], preferred_element_type=jnp.float32) + bias

    def group_norm(h32, gamma, beta):
        # Stats per (batch element, group): reduce over T first, then tiny group matmuls.
        h3 = h32.reshape(Bb, T, C_out)
        s1 = jnp.sum(h3, axis=1)                               # (Bb, C)
        s2 = jnp.sum(h3 * h3, axis=1)                          # (Bb, C)
        s12 = jnp.concatenate([s1, s2], axis=0)                # (2*Bb, C)
        # transposed-RHS matmul: contract channel axis against agc's channel axis
        sg = lax.dot_general(s12, agc, (((1,), (1,)), ((), ())),
                             preferred_element_type=jnp.float32)   # (2*Bb, G)
        inv_n = 1.0 / float(cpg * T)
        mean_g = sg[:Bb] * inv_n
        var_g = jnp.maximum(sg[Bb:] * inv_n - mean_g * mean_g, 0.0)  # clamp: no NaN
        inv_g = lax.rsqrt(var_g + EPS)                         # (Bb, G)
        mic = jnp.dot(jnp.concatenate([mean_g, inv_g], axis=0), agc,
                      preferred_element_type=jnp.float32)      # (2*Bb, C)
        scale = mic[Bb:] * gamma                               # (Bb, C)
        shift = beta - mic[:Bb] * scale                        # (Bb, C)
        out3 = h3 * scale[:, None, :] + shift[:, None, :]
        return out3.reshape(M, C_out)

    def mish(v):
        # mish(x) = x * ((1+e^x)^2 - 1) / ((1+e^x)^2 + 1)   (single exp)
        s = jnp.exp(jnp.minimum(v, 20.0))
        t = (1.0 + s) * (1.0 + s)
        num = v * (t - 1.0)
        if approx_recip:
            return num * pl.reciprocal(t + 1.0, approx=True)
        return num / (t + 1.0)

    # ---- conv1 block: Conv1d -> GroupNorm -> Mish, then FiLM ----
    h = mish(group_norm(conv_same(x32, w1_ref, b1), g1w, g1b))
    h3 = h.reshape(Bb, T, C_out)
    film_scale = sb[:, 0, :][:, None, :]                       # (Bb, 1, C)
    film_bias = sb[:, 1, :][:, None, :]
    h = (film_scale * h3 + film_bias).reshape(M, C_out)

    # ---- conv2 block: Conv1d -> GroupNorm -> Mish ----
    h = mish(group_norm(conv_same(h, w2_ref, b2), g2w, g2b))

    # ---- residual path ----
    if has_res:
        res = jnp.dot(x32.astype(mm_dtype), wres_ref[...],
                      preferred_element_type=jnp.float32) + bres
    else:
        res = x32                                              # identity residual, f32

    o_ref[...] = (h + res).reshape(Bb, T, C_out).astype(o_ref.dtype)


def prepare_params(params, *, kernel_size=3, n_groups=8, matmul_dtype=None):
    """One-time layout plumbing: transpose/cast weights, pack per-channel vectors."""
    C_out, C_in, K = params["conv1_w"].shape
    assert K == kernel_size
    if matmul_dtype is None:
        matmul_dtype = jnp.bfloat16 if C_out >= 512 else jnp.float32
    mm = jnp.dtype(matmul_dtype)
    has_res = params.get("res_w") is not None

    # Conv weights (C_out, C_in, K) -> (K, C_in, C_out) -> (K*C_in, C_out)
    w1 = jnp.transpose(params["conv1_w"], (2, 1, 0)).reshape(K * C_in, C_out).astype(mm)
    w2 = jnp.transpose(params["conv2_w"], (2, 1, 0)).reshape(K * C_out, C_out).astype(mm)
    wres = (jnp.transpose(params["res_w"][:, :, 0], (1, 0)).astype(mm) if has_res else None)

    zeros_c = jnp.zeros((C_out,), jnp.float32)
    bres = params["res_b"].astype(jnp.float32) if has_res else zeros_c
    vec = jnp.stack([params["conv1_b"], params["gn1_w"], params["gn1_b"],
                     params["conv2_b"], params["gn2_w"], params["gn2_b"],
                     bres, zeros_c], axis=0).astype(jnp.float32)       # (8, C_out)

    grp_id = jnp.arange(C_out) // (C_out // n_groups)
    agc = (jnp.arange(n_groups)[:, None] == grp_id[None, :]).astype(jnp.float32)  # (G, C)

    return dict(w1=w1, w2=w2, wres=wres, vec=vec, agc=agc,
                lin_w_t=params["lin_w"].astype(jnp.float32).T,
                lin_b=params["lin_b"].astype(jnp.float32),
                K=K, C_in=C_in, C_out=C_out, n_groups=n_groups,
                mm=mm, has_res=has_res)


def diffusion_cond_res_block_1d(x, cond, prepared, *, use_film=False,
                                batch_block=None, out_dtype=jnp.float32):
    """x: (B, in_channels, T) (PyTorch NCT), cond: (B, cond_dim)."""
    B, C_in, T = x.shape
    p = prepared
    assert C_in == p["C_in"]
    K, C_out, G = p["K"], p["C_out"], p["n_groups"]
    cpg = C_out // G
    mm = p["mm"]
    has_res = p["has_res"]
    if not has_res:
        assert C_in == C_out, "identity residual requires in_channels == out_channels"

    Bb = batch_block or _pick_batch_block(B, T)
    assert B % Bb == 0

    # ---------------- cond encoder hoisted out of the kernel ----------------
    c = cond.astype(jnp.float32)
    c = c * jnp.tanh(jax.nn.softplus(c))                                   # Mish
    emb = c @ p["lin_w_t"] + p["lin_b"]
    if use_film:
        scale, bias = emb[:, :C_out], emb[:, C_out:]
    else:
        scale = jnp.ones((B, C_out), jnp.float32)
        bias = emb
    sb = jnp.stack([scale, bias], axis=1)                                  # (B, 2, C_out)

    x_tc = jnp.transpose(x, (0, 2, 1)).astype(jnp.float32)                 # (B, T, C_in) f32

    approx_recip = (mm == jnp.dtype(jnp.bfloat16))
    kernel = functools.partial(_block_kernel, K=K, T=T, Bb=Bb, C_in=C_in,
                               C_out=C_out, cpg=cpg, has_res=has_res,
                               mm_dtype=mm, approx_recip=approx_recip)

    inputs = [x_tc, sb, p["w1"], p["w2"]]
    if has_res:
        inputs.append(p["wres"])
    inputs += [p["vec"], p["agc"]]

    def build_specs(single_buffer):
        ckw = dict(pipeline_mode=pl.Buffered(1)) if single_buffer else {}
        specs = [
            pl.BlockSpec((Bb, T, C_in), lambda b: (b, 0, 0)),
            pl.BlockSpec((Bb, 2, C_out), lambda b: (b, 0, 0)),
            pl.BlockSpec((K * C_in, C_out), lambda b: (0, 0), **ckw),
            pl.BlockSpec((K * C_out, C_out), lambda b: (0, 0), **ckw),
        ]
        if has_res:
            specs.append(pl.BlockSpec((C_in, C_out), lambda b: (0, 0), **ckw))
        specs += [
            pl.BlockSpec((8, C_out), lambda b: (0, 0), **ckw),
            pl.BlockSpec((G, C_out), lambda b: (0, 0), **ckw),
        ]
        return specs

    out_spec = pl.BlockSpec((Bb, T, C_out), lambda b: (b, 0, 0))
    out_shape = jax.ShapeDtypeStruct((B, T, C_out), out_dtype)
    cparams = pltpu.CompilerParams(dimension_semantics=("parallel",),
                                   vmem_limit_bytes=_vmem_limit_bytes())

    def run(single_buffer):
        return pl.pallas_call(kernel, out_shape=out_shape, grid=(B // Bb,),
                              in_specs=build_specs(single_buffer),
                              out_specs=out_spec,
                              compiler_params=cparams)(*inputs)

    try:
        out_tc = run(True)     # grid-invariant inputs single-buffered (VMEM savings)
    except Exception:
        # TODO(synk): pl.Buffered(1) not accepted on this jax build; use default buffering.
        out_tc = run(False)

    return jnp.transpose(out_tc, (0, 2, 1))  # back to (B, C_out, T)


# ----------------------- pure-JAX reference (for checking) -----------------------
def reference(x, cond, params, *, kernel_size, n_groups, use_film):
    pad = kernel_size // 2
    C_out = params["conv1_w"].shape[0]

    def conv1d(h, w, b, pd):
        y = lax.conv_general_dilated(h, w, window_strides=(1,), padding=[(pd, pd)],
                                     dimension_numbers=("NCH", "OIH", "NCH"))
        return y + b[None, :, None]

    def gn(h, gamma, beta):
        B, C, T = h.shape
        hg = h.reshape(B, n_groups, C // n_groups, T)
        mean = hg.mean(axis=(2, 3), keepdims=True)
        var = hg.var(axis=(2, 3), keepdims=True)
        hn = ((hg - mean) / jnp.sqrt(var + EPS)).reshape(B, C, T)
        return hn * gamma[None, :, None] + beta[None, :, None]

    def mish(v):
        return v * jnp.tanh(jax.nn.softplus(v))

    h = mish(gn(conv1d(x, params["conv1_w"], params["conv1_b"], pad),
                params["gn1_w"], params["gn1_b"]))
    emb = mish(cond) @ params["lin_w"].T + params["lin_b"]
    emb = emb[:, :, None]
    if use_film:
        h = emb[:, :C_out] * h + emb[:, C_out:]
    else:
        h = h + emb
    h = mish(gn(conv1d(h, params["conv2_w"], params["conv2_b"], pad),
                params["gn2_w"], params["gn2_b"]))
    if params.get("res_w") is not None:
        res = conv1d(x, params["res_w"], params["res_b"], 0)
    else:
        res = x
    return h + res


if __name__ == "__main__":
    B, T, cond_dim, K, G = 2, 16, 32, 3, 8

    def make_params(key, C_in, C_out, use_film, with_res):
        cond_channels = 2 * C_out if use_film else C_out
        ks = jax.random.split(key, 12)
        return {
            "conv1_w": 0.1 * jax.random.normal(ks[0], (C_out, C_in, K), jnp.float32),
            "conv1_b": 0.1 * jax.random.normal(ks[1], (C_out,), jnp.float32),
            "gn1_w": 1.0 + 0.1 * jax.random.normal(ks[2], (C_out,), jnp.float32),
            "gn1_b": 0.1 * jax.random.normal(ks[3], (C_out,), jnp.float32),
            "lin_w": 0.1 * jax.random.normal(ks[4], (cond_channels, cond_dim), jnp.float32),
            "lin_b": 0.1 * jax.random.normal(ks[5], (cond_channels,), jnp.float32),
            "conv2_w": 0.1 * jax.random.normal(ks[6], (C_out, C_out, K), jnp.float32),
            "conv2_b": 0.1 * jax.random.normal(ks[7], (C_out,), jnp.float32),
            "gn2_w": 1.0 + 0.1 * jax.random.normal(ks[8], (C_out,), jnp.float32),
            "gn2_b": 0.1 * jax.random.normal(ks[9], (C_out,), jnp.float32),
            "res_w": (0.1 * jax.random.normal(ks[10], (C_out, C_in, 1), jnp.float32)
                      if with_res else None),
            "res_b": (0.1 * jax.random.normal(ks[11], (C_out,), jnp.float32)
                      if with_res else None),
        }

    key = jax.random.PRNGKey(0)
    #        C_in  C_out  film   res    matmul dtype   tol
    cases = [(8,   16,    True,  True,  jnp.float32,   1e-3),   # FiLM + 1x1 residual conv
             (16,  16,    False, False, jnp.float32,   1e-3),   # additive cond + identity residual
             (8,   16,    True,  True,  jnp.bfloat16,  4e-2)]   # bf16 matmuls, f32 accum/stats

    for idx, (C_in, C_out, use_film, with_res, mm, tol) in enumerate(cases):
        k_p, k_x, k_c, key = jax.random.split(key, 4)
        params = make_params(k_p, C_in, C_out, use_film, with_res)
        x = jax.random.normal(k_x, (B, C_in, T), jnp.float32)
        cond = jax.random.normal(k_c, (B, cond_dim), jnp.float32)

        prepared = prepare_params(params, kernel_size=K, n_groups=G, matmul_dtype=mm)
        out = diffusion_cond_res_block_1d(x, cond, prepared, use_film=use_film)
        out = jax.block_until_ready(out)

        ref = reference(x, cond, params, kernel_size=K, n_groups=G, use_film=use_film)
        assert out.shape == (B, C_out, T), (idx, out.shape)
        max_err = float(jnp.max(jnp.abs(out.astype(jnp.float32) - ref)))
        assert max_err < tol, f"case {idx}: mismatch vs reference: {max_err} >= {tol}"

    print("KERNEL_OK")
</pallas_src>

<mosaic_0001>
module attributes {stable_mosaic.version = 11 : i64} {
  func.func @_block_kernel(%arg0: i32, %arg1: memref<2x16x8xf32, #tpu.memory_space<vmem>>, %arg2: memref<2x2x16xf32, #tpu.memory_space<vmem>>, %arg3: memref<24x16xf32, #tpu.memory_space<vmem>>, %arg4: memref<48x16xf32, #tpu.memory_space<vmem>>, %arg5: memref<8x16xf32, #tpu.memory_space<vmem>>, %arg6: memref<8x16xf32, #tpu.memory_space<vmem>>, %arg7: memref<8x16xf32, #tpu.memory_space<vmem>>, %arg8: memref<2x16x16xf32, #tpu.memory_space<vmem>>) attributes {dimension_semantics = [#tpu.dimension_semantics<parallel>], iteration_bounds = array<i64: 1>, scalar_prefetch = 0 : i64, scratch_operands = 0 : i64, tpu.core_type = #tpu.core_type<tc>, window_params = [{transform_indices = @transform_0, window_bounds = array<i64: 2, 16, 8>}, {transform_indices = @transform_1, window_bounds = array<i64: 2, 2, 16>}, {pipeline_mode = #tpu.pipeline_mode<synchronous>, transform_indices = @transform_2, window_bounds = array<i64: 24, 16>}, {pipeline_mode = #tpu.pipeline_mode<synchronous>, transform_indices = @transform_3, window_bounds = array<i64: 48, 16>}, {pipeline_mode = #tpu.pipeline_mode<synchronous>, transform_indices = @transform_4, window_bounds = array<i64: 8, 16>}, {pipeline_mode = #tpu.pipeline_mode<synchronous>, transform_indices = @transform_5, window_bounds = array<i64: 8, 16>}, {pipeline_mode = #tpu.pipeline_mode<synchronous>, transform_indices = @transform_6, window_bounds = array<i64: 8, 16>}, {transform_indices = @transform_7, window_bounds = array<i64: 2, 16, 16>}]} {
    %c0 = arith.constant 0 : index
    %c0_0 = arith.constant 0 : index
    %c0_1 = arith.constant 0 : index
    %0 = vector.load %arg1[%c0, %c0_0, %c0_1] : memref<2x16x8xf32, #tpu.memory_space<vmem>>, vector<2x16x8xf32>
    %1 = vector.shape_cast %0 : vector<2x16x8xf32> to vector<32x8xf32>
    %c0_2 = arith.constant 0 : index
    %c0_3 = arith.constant 0 : index
    %2 = vector.load %arg6[%c0_2, %c0_3] : memref<8x16xf32, #tpu.memory_space<vmem>>, vector<8x16xf32>
    %c0_4 = arith.constant 0 : index
    %c0_5 = arith.constant 0 : index
    %3 = vector.load %arg7[%c0_4, %c0_5] : memref<8x16xf32, #tpu.memory_space<vmem>>, vector<8x16xf32>
    %c0_6 = arith.constant 0 : index
    %c0_7 = arith.constant 0 : index
    %c0_8 = arith.constant 0 : index
    %4 = vector.load %arg2[%c0_6, %c0_7, %c0_8] : memref<2x2x16xf32, #tpu.memory_space<vmem>>, vector<2x2x16xf32>
    %5 = vector.extract_strided_slice %2 {offsets = [0, 0], sizes = [1, 16], strides = [1, 1]} : vector<8x16xf32> to vector<1x16xf32>
    %6 = vector.extract_strided_slice %2 {offsets = [1, 0], sizes = [1, 16], strides = [1, 1]} : vector<8x16xf32> to vector<1x16xf32>
    %7 = vector.extract_strided_slice %2 {offsets = [2, 0], sizes = [1, 16], strides = [1, 1]} : vector<8x16xf32> to vector<1x16xf32>
    %8 = vector.extract_strided_slice %2 {offsets = [3, 0], sizes = [1, 16], strides = [1, 1]} : vector<8x16xf32> to vector<1x16xf32>
    %9 = vector.extract_strided_slice %2 {offsets = [4, 0], sizes = [1, 16], strides = [1, 1]} : vector<8x16xf32> to vector<1x16xf32>
    %10 = vector.extract_strided_slice %2 {offsets = [5, 0], sizes = [1, 16], strides = [1, 1]} : vector<8x16xf32> to vector<1x16xf32>
    %11 = vector.extract_strided_slice %2 {offsets = [6, 0], sizes = [1, 16], strides = [1, 1]} : vector<8x16xf32> to vector<1x16xf32>
    %12 = tpu.iota {dimensions = array<i32: 0>} : vector<32x1xi32>
    %c16_i32 = arith.constant 16 : i32
    %c0_i32 = arith.constant 0 : i32
    %13 = arith.cmpi eq, %c16_i32, %c0_i32 : i32
    %c1_i32 = arith.constant 1 : i32
    %14 = arith.select %13, %c1_i32, %c16_i32 : i32
    %15 = vector.broadcast %14 : i32 to vector<32x1xi32>
    %16 = arith.remsi %12, %15 : vector<32x1xi32>
    %c0_i32_9 = arith.constant 0 : i32
    %17 = vector.broadcast %c0_i32_9 : i32 to vector<32x1xi32>
    %18 = arith.cmpi ne, %16, %17 : vector<32x1xi32>
    %c0_i32_10 = arith.constant 0 : i32
    %19 = vector.broadcast %c0_i32_10 : i32 to vector<32x1xi32>
    %20 = arith.cmpi slt, %16, %19 : vector<32x1xi32>
    %c0_i32_11 = arith.constant 0 : i32
    %21 = arith.cmpi slt, %14, %c0_i32_11 : i32
    %22 = vector.broadcast %21 : i1 to vector<32x1xi1>
    %23 = vector.broadcast %22 : vector<32x1xi1> to vector<32x1xi1>
    %24 = arith.xori %20, %23 : vector<32x1xi1>
    %25 = arith.andi %24, %18 : vector<32x1xi1>
    %26 = vector.broadcast %14 : i32 to vector<32x1xi32>
    %27 = arith.addi %16, %26 : vector<32x1xi32>
    %28 = arith.select %25, %27, %16 : vector<32x1xi1>, vector<32x1xi32>
    %c1_i32_12 = arith.constant 1 : i32
    %29 = vector.broadcast %c1_i32_12 : i32 to vector<32x1xi32>
    %30 = arith.cmpi sge, %28, %29 : vector<32x1xi32>
    %c16_i32_13 = arith.constant 16 : i32
    %31 = vector.broadcast %c16_i32_13 : i32 to vector<32x1xi32>
    %32 = arith.cmpi sle, %28, %31 : vector<32x1xi32>
    %33 = arith.andi %30, %32 : vector<32x1xi1>
    %c-1_i32 = arith.constant -1 : i32
    %34 = vector.broadcast %c-1_i32 : i32 to vector<32x1xi32>
    %35 = arith.cmpi sge, %28, %34 : vector<32x1xi32>
    %c14_i32 = arith.constant 14 : i32
    %36 = vector.broadcast %c14_i32 : i32 to vector<32x1xi32>
    %37 = arith.cmpi sle, %28, %36 : vector<32x1xi32>
    %38 = arith.andi %35, %37 : vector<32x1xi1>
    %c1_i32_14 = arith.constant 1 : i32
    %39 = tpu.dynamic_rotate %1 by %c1_i32_14 dim 0 : vector<32x8xf32>, i32 -> vector<32x8xf32>
    %cst = arith.constant 0.000000e+00 : f32
    %40 = vector.shape_cast %33 : vector<32x1xi1> to vector<32x1xi1>
    %41 = vector.broadcast %40 : vector<32x1xi1> to vector<32x8xi1>
    %42 = vector.broadcast %cst : f32 to vector<32x8xf32>
    %43 = arith.select %41, %39, %42 : vector<32x8xi1>, vector<32x8xf32>
    %c31_i32 = arith.constant 31 : i32
    %44 = tpu.dynamic_rotate %1 by %c31_i32 dim 0 : vector<32x8xf32>, i32 -> vector<32x8xf32>
    %cst_15 = arith.constant 0.000000e+00 : f32
    %45 = vector.shape_cast %38 : vector<32x1xi1> to vector<32x1xi1>
    %46 = vector.broadcast %45 : vector<32x1xi1> to vector<32x8xi1>
    %47 = vector.broadcast %cst_15 : f32 to vector<32x8xf32>
    %48 = arith.select %46, %44, %47 : vector<32x8xi1>, vector<32x8xf32>
    %49 = tpu.concatenate %43, %1, %48 in 1 : vector<32x8xf32>, vector<32x8xf32>, vector<32x8xf32> -> vector<32x24xf32>
    %c0_16 = arith.constant 0 : index
    %c0_17 = arith.constant 0 : index
    %50 = vector.load %arg3[%c0_16, %c0_17] : memref<24x16xf32, #tpu.memory_space<vmem>>, vector<24x16xf32>
    %cst_18 = arith.constant dense<0.000000e+00> : vector<32x16xf32>
    %51 = tpu.matmul %49, %50, %cst_18 {dimension_numbers = #tpu.dot_dimension_numbers<[1], [0], [0], [1], [0, 0, 1, 1], [], []>} : vector<32x24xf32>, vector<24x16xf32>, vector<32x16xf32> -> vector<32x16xf32>
    %52 = vector.broadcast %5 : vector<1x16xf32> to vector<32x16xf32>
    %53 = arith.addf %51, %52 : vector<32x16xf32>
    %54 = vector.shape_cast %53 : vector<32x16xf32> to vector<2x16x16xf32>
    %cst_19 = arith.constant dense<0.000000e+00> : vector<2x16xf32>
    %55 = vector.multi_reduction <add>, %54, %cst_19 [1] : vector<2x16x16xf32> to vector<2x16xf32>
    %56 = arith.mulf %54, %54 : vector<2x16x16xf32>
    %cst_20 = arith.constant dense<0.000000e+00> : vector<2x16xf32>
    %57 = vector.multi_reduction <add>, %56, %cst_20 [1] : vector<2x16x16xf32> to vector<2x16xf32>
    %58 = tpu.concatenate %55, %57 in 0 : vector<2x16xf32>, vector<2x16xf32> -> vector<4x16xf32>
    %cst_21 = arith.constant dense<0.000000e+00> : vector<4x8xf32>
    %59 = tpu.matmul %58, %3, %cst_21 {dimension_numbers = #tpu.dot_dimension_numbers<[1], [1], [0], [0], [0, 0, 1, 0], [], []>} : vector<4x16xf32>, vector<8x16xf32>, vector<4x8xf32> -> vector<4x8xf32>
    %60 = vector.extract_strided_slice %59 {offsets = [0, 0], sizes = [2, 8], strides = [1, 1]} : vector<4x8xf32> to vector<2x8xf32>
    %cst_22 = arith.constant 3.125000e-02 : f32
    %61 = vector.broadcast %cst_22 : f32 to vector<2x8xf32>
    %62 = arith.mulf %60, %61 : vector<2x8xf32>
    %63 = vector.extract_strided_slice %59 {offsets = [2, 0], sizes = [2, 8], strides = [1, 1]} : vector<4x8xf32> to vector<2x8xf32>
    %cst_23 = arith.constant 3.125000e-02 : f32
    %64 = vector.broadcast %cst_23 : f32 to vector<2x8xf32>
    %65 = arith.mulf %63, %64 : vector<2x8xf32>
    %66 = arith.mulf %62, %62 : vector<2x8xf32>
    %67 = arith.subf %65, %66 : vector<2x8xf32>
    %cst_24 = arith.constant 0.000000e+00 : f32
    %68 = vector.broadcast %cst_24 : f32 to vector<2x8xf32>
    %69 = arith.maximumf %67, %68 : vector<2x8xf32>
    %cst_25 = arith.constant 9.99999974E-6 : f32
    %70 = vector.broadcast %cst_25 : f32 to vector<2x8xf32>
    %71 = arith.addf %69, %70 : vector<2x8xf32>
    %72 = math.rsqrt %71 : vector<2x8xf32>
    %73 = tpu.concatenate %62, %72 in 0 : vector<2x8xf32>, vector<2x8xf32> -> vector<4x8xf32>
    %cst_26 = arith.constant dense<0.000000e+00> : vector<4x16xf32>
    %74 = tpu.matmul %73, %3, %cst_26 {dimension_numbers = #tpu.dot_dimension_numbers<[1], [0], [0], [1], [0, 0, 1, 1], [], []>} : vector<4x8xf32>, vector<8x16xf32>, vector<4x16xf32> -> vector<4x16xf32>
    %75 = vector.extract_strided_slice %74 {offsets = [2, 0], sizes = [2, 16], strides = [1, 1]} : vector<4x16xf32> to vector<2x16xf32>
    %76 = vector.broadcast %6 : vector<1x16xf32> to vector<2x16xf32>
    %77 = arith.mulf %75, %76 : vector<2x16xf32>
    %78 = vector.extract_strided_slice %74 {offsets = [0, 0], sizes = [2, 16], strides = [1, 1]} : vector<4x16xf32> to vector<2x16xf32>
    %79 = arith.mulf %78, %77 : vector<2x16xf32>
    %80 = vector.broadcast %7 : vector<1x16xf32> to vector<2x16xf32>
    %81 = arith.subf %80, %79 : vector<2x16xf32>
    %82 = vector.shape_cast %77 : vector<2x16xf32> to vector<2x1x16xf32>
    %83 = vector.broadcast %82 : vector<2x1x16xf32> to vector<2x16x16xf32>
    %84 = arith.mulf %54, %83 : vector<2x16x16xf32>
    %85 = vector.shape_cast %81 : vector<2x16xf32> to vector<2x1x16xf32>
    %86 = vector.broadcast %85 : vector<2x1x16xf32> to vector<2x16x16xf32>
    %87 = arith.addf %84, %86 : vector<2x16x16xf32>
    %88 = vector.shape_cast %87 : vector<2x16x16xf32> to vector<32x16xf32>
    %cst_27 = arith.constant 2.000000e+01 : f32
    %89 = vector.broadcast %cst_27 : f32 to vector<32x16xf32>
    %90 = arith.minimumf %88, %89 : vector<32x16xf32>
    %91 = math.exp %90 : vector<32x16xf32>
    %cst_28 = arith.constant 1.000000e+00 : f32
    %92 = vector.broadcast %cst_28 : f32 to vector<32x16xf32>
    %93 = arith.addf %92, %91 : vector<32x16xf32>
    %cst_29 = arith.constant 1.000000e+00 : f32
    %94 = vector.broadcast %cst_29 : f32 to vector<32x16xf32>
    %95 = arith.addf %94, %91 : vector<32x16xf32>
    %96 = arith.mulf %93, %95 : vector<32x16xf32>
    %cst_30 = arith.constant 1.000000e+00 : f32
    %97 = vector.broadcast %cst_30 : f32 to vector<32x16xf32>
    %98 = arith.subf %96, %97 : vector<32x16xf32>
    %99 = arith.mulf %88, %98 : vector<32x16xf32>
    %cst_31 = arith.constant 1.000000e+00 : f32
    %100 = vector.broadcast %cst_31 : f32 to vector<32x16xf32>
    %101 = arith.addf %96, %100 : vector<32x16xf32>
    %102 = arith.divf %99, %101 : vector<32x16xf32>
    %103 = vector.shape_cast %102 : vector<32x16xf32> to vector<2x16x16xf32>
    %104 = vector.extract_strided_slice %4 {offsets = [0, 0, 0], sizes = [2, 1, 16], strides = [1, 1, 1]} : vector<2x2x16xf32> to vector<2x1x16xf32>
    %105 = vector.shape_cast %104 : vector<2x1x16xf32> to vector<2x16xf32>
    %106 = vector.shape_cast %105 : vector<2x16xf32> to vector<2x1x16xf32>
    %107 = vector.extract_strided_slice %4 {offsets = [0, 1, 0], sizes = [2, 1, 16], strides = [1, 1, 1]} : vector<2x2x16xf32> to vector<2x1x16xf32>
    %108 = vector.shape_cast %107 : vector<2x1x16xf32> to vector<2x16xf32>
    %109 = vector.shape_cast %108 : vector<2x16xf32> to vector<2x1x16xf32>
    %110 = vector.broadcast %106 : vector<2x1x16xf32> to vector<2x16x16xf32>
    %111 = arith.mulf %110, %103 : vector<2x16x16xf32>
    %112 = vector.broadcast %109 : vector<2x1x16xf32> to vector<2x16x16xf32>
    %113 = arith.addf %111, %112 : vector<2x16x16xf32>
    %114 = vector.shape_cast %113 : vector<2x16x16xf32> to vector<32x16xf32>
    %c1_i32_32 = arith.constant 1 : i32
    %115 = tpu.dynamic_rotate %114 by %c1_i32_32 dim 0 : vector<32x16xf32>, i32 -> vector<32x16xf32>
    %cst_33 = arith.constant 0.000000e+00 : f32
    %116 = vector.shape_cast %33 : vector<32x1xi1> to vector<32x1xi1>
    %117 = vector.broadcast %116 : vector<32x1xi1> to vector<32x16xi1>
    %118 = vector.broadcast %cst_33 : f32 to vector<32x16xf32>
    %119 = arith.select %117, %115, %118 : vector<32x16xi1>, vector<32x16xf32>
    %c31_i32_34 = arith.constant 31 : i32
    %120 = tpu.dynamic_rotate %114 by %c31_i32_34 dim 0 : vector<32x16xf32>, i32 -> vector<32x16xf32>
    %cst_35 = arith.constant 0.000000e+00 : f32
    %121 = vector.shape_cast %38 : vector<32x1xi1> to vector<32x1xi1>
    %122 = vector.broadcast %121 : vector<32x1xi1> to vector<32x16xi1>
    %123 = vector.broadcast %cst_35 : f32 to vector<32x16xf32>
    %124 = arith.select %122, %120, %123 : vector<32x16xi1>, vector<32x16xf32>
    %125 = tpu.concatenate %119, %114, %124 in 1 : vector<32x16xf32>, vector<32x16xf32>, vector<32x16xf32> -> vector<32x48xf32>
    %c0_36 = arith.constant 0 : index
    %c0_37 = arith.constant 0 : index
    %126 = vector.load %arg4[%c0_36, %c0_37] : memref<48x16xf32, #tpu.memory_space<vmem>>, vector<48x16xf32>
    %cst_38 = arith.constant dense<0.000000e+00> : vector<32x16xf32>
    %127 = tpu.matmul %125, %126, %cst_38 {dimension_numbers = #tpu.dot_dimension_numbers<[1], [0], [0], [1], [0, 0, 1, 1], [], []>} : vector<32x48xf32>, vector<48x16xf32>, vector<32x16xf32> -> vector<32x16xf32>
    %128 = vector.broadcast %8 : vector<1x16xf32> to vector<32x16xf32>
    %129 = arith.addf %127, %128 : vector<32x16xf32>
    %130 = vector.shape_cast %129 : vector<32x16xf32> to vector<2x16x16xf32>
    %cst_39 = arith.constant dense<0.000000e+00> : vector<2x16xf32>
    %131 = vector.multi_reduction <add>, %130, %cst_39 [1] : vector<2x16x16xf32> to vector<2x16xf32>
    %132 = arith.mulf %130, %130 : vector<2x16x16xf32>
    %cst_40 = arith.constant dense<0.000000e+00> : vector<2x16xf32>
    %133 = vector.multi_reduction <add>, %132, %cst_40 [1] : vector<2x16x16xf32> to vector<2x16xf32>
    %134 = tpu.concatenate %131, %133 in 0 : vector<2x16xf32>, vector<2x16xf32> -> vector<4x16xf32>
    %cst_41 = arith.constant dense<0.000000e+00> : vector<4x8xf32>
    %135 = tpu.matmul %134, %3, %cst_41 {dimension_numbers = #tpu.dot_dimension_numbers<[1], [1], [0], [0], [0, 0, 1, 0], [], []>} : vector<4x16xf32>, vector<8x16xf32>, vector<4x8xf32> -> vector<4x8xf32>
    %136 = vector.extract_strided_slice %135 {offsets = [0, 0], sizes = [2, 8], strides = [1, 1]} : vector<4x8xf32> to vector<2x8xf32>
    %cst_42 = arith.constant 3.125000e-02 : f32
    %137 = vector.broadcast %cst_42 : f32 to vector<2x8xf32>
    %138 = arith.mulf %136, %137 : vector<2x8xf32>
    %139 = vector.extract_strided_slice %135 {offsets = [2, 0], sizes = [2, 8], strides = [1, 1]} : vector<4x8xf32> to vector<2x8xf32>
    %cst_43 = arith.constant 3.125000e-02 : f32
    %140 = vector.broadcast %cst_43 : f32 to vector<2x8xf32>
    %141 = arith.mulf %139, %140 : vector<2x8xf32>
    %142 = arith.mulf %138, %138 : vector<2x8xf32>
    %143 = arith.subf %141, %142 : vector<2x8xf32>
    %cst_44 = arith.constant 0.000000e+00 : f32
    %144 = vector.broadcast %cst_44 : f32 to vector<2x8xf32>
    %145 = arith.maximumf %143, %144 : vector<2x8xf32>
    %cst_45 = arith.constant 9.99999974E-6 : f32
    %146 = vector.broadcast %cst_45 : f32 to vector<2x8xf32>
    %147 = arith.addf %145, %146 : vector<2x8xf32>
    %148 = math.rsqrt %147 : vector<2x8xf32>
    %149 = tpu.concatenate %138, %148 in 0 : vector<2x8xf32>, vector<2x8xf32> -> vector<4x8xf32>
    %cst_46 = arith.constant dense<0.000000e+00> : vector<4x16xf32>
    %150 = tpu.matmul %149, %3, %cst_46 {dimension_numbers = #tpu.dot_dimension_numbers<[1], [0], [0], [1], [0, 0, 1, 1], [], []>} : vector<4x8xf32>, vector<8x16xf32>, vector<4x16xf32> -> vector<4x16xf32>
    %151 = vector.extract_strided_slice %150 {offsets = [2, 0], sizes = [2, 16], strides = [1, 1]} : vector<4x16xf32> to vector<2x16xf32>
    %152 = vector.broadcast %9 : vector<1x16xf32> to vector<2x16xf32>
    %153 = arith.mulf %151, %152 : vector<2x16xf32>
    %154 = vector.extract_strided_slice %150 {offsets = [0, 0], sizes = [2, 16], strides = [1, 1]} : vector<4x16xf32> to vector<2x16xf32>
    %155 = arith.mulf %154, %153 : vector<2x16xf32>
    %156 = vector.broadcast %10 : vector<1x16xf32> to vector<2x16xf32>
    %157 = arith.subf %156, %155 : vector<2x16xf32>
    %158 = vector.shape_cast %153 : vector<2x16xf32> to vector<2x1x16xf32>
    %159 = vector.broadcast %158 : vector<2x1x16xf32> to vector<2x16x16xf32>
    %160 = arith.mulf %130, %159 : vector<2x16x16xf32>
    %161 = vector.shape_cast %157 : vector<2x16xf32> to vector<2x1x16xf32>
    %162 = vector.broadcast %161 : vector<2x1x16xf32> to vector<2x16x16xf32>
    %163 = arith.addf %160, %162 : vector<2x16x16xf32>
    %164 = vector.shape_cast %163 : vector<2x16x16xf32> to vector<32x16xf32>
    %cst_47 = arith.constant 2.000000e+01 : f32
    %165 = vector.broadcast %cst_47 : f32 to vector<32x16xf32>
    %166 = arith.minimumf %164, %165 : vector<32x16xf32>
    %167 = math.exp %166 : vector<32x16xf32>
    %cst_48 = arith.constant 1.000000e+00 : f32
    %168 = vector.broadcast %cst_48 : f32 to vector<32x16xf32>
    %169 = arith.addf %168, %167 : vector<32x16xf32>
    %cst_49 = arith.constant 1.000000e+00 : f32
    %170 = vector.broadcast %cst_49 : f32 to vector<32x16xf32>
    %171 = arith.addf %170, %167 : vector<32x16xf32>
    %172 = arith.mulf %169, %171 : vector<32x16xf32>
    %cst_50 = arith.constant 1.000000e+00 : f32
    %173 = vector.broadcast %cst_50 : f32 to vector<32x16xf32>
    %174 = arith.subf %172, %173 : vector<32x16xf32>
    %175 = arith.mulf %164, %174 : vector<32x16xf32>
    %cst_51 = arith.constant 1.000000e+00 : f32
    %176 = vector.broadcast %cst_51 : f32 to vector<32x16xf32>
    %177 = arith.addf %172, %176 : vector<32x16xf32>
    %178 = arith.divf %175, %177 : vector<32x16xf32>
    %c0_52 = arith.constant 0 : index
    %c0_53 = arith.constant 0 : index
    %179 = vector.load %arg5[%c0_52, %c0_53] : memref<8x16xf32, #tpu.memory_space<vmem>>, vector<8x16xf32>
    %cst_54 = arith.constant dense<0.000000e+00> : vector<32x16xf32>
    %180 = tpu.matmul %1, %179, %cst_54 {dimension_numbers = #tpu.dot_dimension_numbers<[1], [0], [0], [1], [0, 0, 1, 1], [], []>} : vector<32x8xf32>, vector<8x16xf32>, vector<32x16xf32> -> vector<32x16xf32>
    %181 = vector.broadcast %11 : vector<1x16xf32> to vector<32x16xf32>
    %182 = arith.addf %180, %181 : vector<32x16xf32>
    %183 = arith.addf %178, %182 : vector<32x16xf32>
    %184 = vector.shape_cast %183 : vector<32x16xf32> to vector<2x16x16xf32>
    %c0_55 = arith.constant 0 : index
    %c0_56 = arith.constant 0 : index
    %c0_57 = arith.constant 0 : index
    %185 = vector.load %arg8[%c0_55, %c0_56, %c0_57] : memref<2x16x16xf32, #tpu.memory_space<vmem>>, vector<2x16x16xf32>
    tpu.vector_store %arg8[%c0_55, %c0_56, %c0_57], %184 {strides = array<i32>} : memref<2x16x16xf32, #tpu.memory_space<vmem>>, vector<2x16x16xf32>,
    return
  }
  func.func @transform_0(%arg0: i32) -> (i32, i32, i32) {
    %c0_i32 = arith.constant 0 : i32
    %c0_i32_0 = arith.constant 0 : i32
    %c0_i32_1 = arith.constant 0 : i32
    return %arg0, %c0_i32, %c0_i32_0 : i32, i32, i32
  }
  func.func @transform_1(%arg0: i32) -> (i32, i32, i32) {
    %c0_i32 = arith.constant 0 : i32
    %c0_i32_0 = arith.constant 0 : i32
    %c0_i32_1 = arith.constant 0 : i32
    return %arg0, %c0_i32, %c0_i32_0 : i32, i32, i32
  }
  func.func @transform_2(%arg0: i32) -> (i32, i32) {
    %c0_i32 = arith.constant 0 : i32
    %c0_i32_0 = arith.constant 0 : i32
    %c0_i32_1 = arith.constant 0 : i32
    return %c0_i32, %c0_i32_0 : i32, i32
  }
  func.func @transform_3(%arg0: i32) -> (i32, i32) {
    %c0_i32 = arith.constant 0 : i32
    %c0_i32_0 = arith.constant 0 : i32
    %c0_i32_1 = arith.constant 0 : i32
    return %c0_i32, %c0_i32_0 : i32, i32
  }
  func.func @transform_4(%arg0: i32) -> (i32, i32) {
    %c0_i32 = arith.constant 0 : i32
    %c0_i32_0 = arith.constant 0 : i32
    %c0_i32_1 = arith.constant 0 : i32
    return %c0_i32, %c0_i32_0 : i32, i32
  }
  func.func @transform_5(%arg0: i32) -> (i32, i32) {
    %c0_i32 = arith.constant 0 : i32
    %c0_i32_0 = arith.constant 0 : i32
    %c0_i32_1 = arith.constant 0 : i32
    return %c0_i32, %c0_i32_0 : i32, i32
  }
  func.func @transform_6(%arg0: i32) -> (i32, i32) {
    %c0_i32 = arith.constant 0 : i32
    %c0_i32_0 = arith.constant 0 : i32
    %c0_i32_1 = arith.constant 0 : i32
    return %c0_i32, %c0_i32_0 : i32, i32
  }
  func.func @transform_7(%arg0: i32) -> (i32, i32, i32) {
    %c0_i32 = arith.constant 0 : i32
    %c0_i32_0 = arith.constant 0 : i32
    %c0_i32_1 = arith.constant 0 : i32
    return %arg0, %c0_i32, %c0_i32_0 : i32, i32, i32
  }
}

module attributes {stable_mosaic.version = 11 : i64} {
  func.func @_block_kernel(%arg0: i32, %arg1: memref<2x16x8xf32, #tpu.memory_space<vmem>>, %arg2: memref<2x2x16xf32, #tpu.memory_space<vmem>>, %arg3: memref<24x16xf32, #tpu.memory_space<vmem>>, %arg4: memref<48x16xf32, #tpu.memory_space<vmem>>, %arg5: memref<8x16xf32, #tpu.memory_space<vmem>>, %arg6: memref<8x16xf32, #tpu.memory_space<vmem>>, %arg7: memref<8x16xf32, #tpu.memory_space<vmem>>, %arg8: memref<2x16x16xf32, #tpu.memory_space<vmem>>) attributes {dimension_semantics = [#tpu.dimension_semantics<parallel>], iteration_bounds = array<i64: 1>, scalar_prefetch = 0 : i64, scratch_operands = 0 : i64, tpu.core_type = #tpu.core_type<tc>, window_params = [{transform_indices = @transform_0, window_bounds = array<i64: 2, 16, 8>}, {transform_indices = @transform_1, window_bounds = array<i64: 2, 2, 16>}, {pipeline_mode = #tpu.pipeline_mode<synchronous>, transform_indices = @transform_2, window_bounds = array<i64: 24, 16>}, {pipeline_mode = #tpu.pipeline_mode<synchronous>, transform_indices = @transform_3, window_bounds = array<i64: 48, 16>}, {pipeline_mode = #tpu.pipeline_mode<synchronous>, transform_indices = @transform_4, window_bounds = array<i64: 8, 16>}, {pipeline_mode = #tpu.pipeline_mode<synchronous>, transform_indices = @transform_5, window_bounds = array<i64: 8, 16>}, {pipeline_mode = #tpu.pipeline_mode<synchronous>, transform_indices = @transform_6, window_bounds = array<i64: 8, 16>}, {transform_indices = @transform_7, window_bounds = array<i64: 2, 16, 16>}]} {
    %c0 = arith.constant 0 : index
    %c0_0 = arith.constant 0 : index
    %c0_1 = arith.constant 0 : index
    %0 = vector.load %arg1[%c0, %c0_0, %c0_1] : memref<2x16x8xf32, #tpu.memory_space<vmem>>, vector<2x16x8xf32>
    %1 = vector.shape_cast %0 : vector<2x16x8xf32> to vector<32x8xf32>
    %c0_2 = arith.constant 0 : index
    %c0_3 = arith.constant 0 : index
    %2 = vector.load %arg6[%c0_2, %c0_3] : memref<8x16xf32, #tpu.memory_space<vmem>>, vector<8x16xf32>
    %c0_4 = arith.constant 0 : index
    %c0_5 = arith.constant 0 : index
    %3 = vector.load %arg7[%c0_4, %c0_5] : memref<8x16xf32, #tpu.memory_space<vmem>>, vector<8x16xf32>
    %c0_6 = arith.constant 0 : index
    %c0_7 = arith.constant 0 : index
    %c0_8 = arith.constant 0 : index
    %4 = vector.load %arg2[%c0_6, %c0_7, %c0_8] : memref<2x2x16xf32, #tpu.memory_space<vmem>>, vector<2x2x16xf32>
    %5 = vector.extract_strided_slice %2 {offsets = [0, 0], sizes = [1, 16], strides = [1, 1]} : vector<8x16xf32> to vector<1x16xf32>
    %6 = vector.extract_strided_slice %2 {offsets = [1, 0], sizes = [1, 16], strides = [1, 1]} : vector<8x16xf32> to vector<1x16xf32>
    %7 = vector.extract_strided_slice %2 {offsets = [2, 0], sizes = [1, 16], strides = [1, 1]} : vector<8x16xf32> to vector<1x16xf32>
    %8 = vector.extract_strided_slice %2 {offsets = [3, 0], sizes = [1, 16], strides = [1, 1]} : vector<8x16xf32> to vector<1x16xf32>
    %9 = vector.extract_strided_slice %2 {offsets = [4, 0], sizes = [1, 16], strides = [1, 1]} : vector<8x16xf32> to vector<1x16xf32>
    %10 = vector.extract_strided_slice %2 {offsets = [5, 0], sizes = [1, 16], strides = [1, 1]} : vector<8x16xf32> to vector<1x16xf32>
    %11 = vector.extract_strided_slice %2 {offsets = [6, 0], sizes = [1, 16], strides = [1, 1]} : vector<8x16xf32> to vector<1x16xf32>
    %12 = tpu.iota {dimensions = array<i32: 0>} : vector<32x1xi32>
    %c16_i32 = arith.constant 16 : i32
    %c0_i32 = arith.constant 0 : i32
    %13 = arith.cmpi eq, %c16_i32, %c0_i32 : i32
    %c1_i32 = arith.constant 1 : i32
    %14 = arith.select %13, %c1_i32, %c16_i32 : i32
    %15 = vector.broadcast %14 : i32 to vector<32x1xi32>
    %16 = arith.remsi %12, %15 : vector<32x1xi32>
    %c0_i32_9 = arith.constant 0 : i32
    %17 = vector.broadcast %c0_i32_9 : i32 to vector<32x1xi32>
    %18 = arith.cmpi ne, %16, %17 : vector<32x1xi32>
    %c0_i32_10 = arith.constant 0 : i32
    %19 = vector.broadcast %c0_i32_10 : i32 to vector<32x1xi32>
    %20 = arith.cmpi slt, %16, %19 : vector<32x1xi32>
    %c0_i32_11 = arith.constant 0 : i32
    %21 = arith.cmpi slt, %14, %c0_i32_11 : i32
    %22 = vector.broadcast %21 : i1 to vector<32x1xi1>
    %23 = vector.broadcast %22 : vector<32x1xi1> to vector<32x1xi1>
    %24 = arith.xori %20, %23 : vector<32x1xi1>
    %25 = arith.andi %24, %18 : vector<32x1xi1>
    %26 = vector.broadcast %14 : i32 to vector<32x1xi32>
    %27 = arith.addi %16, %26 : vector<32x1xi32>
    %28 = arith.select %25, %27, %16 : vector<32x1xi1>, vector<32x1xi32>
    %c1_i32_12 = arith.constant 1 : i32
    %29 = vector.broadcast %c1_i32_12 : i32 to vector<32x1xi32>
    %30 = arith.cmpi sge, %28, %29 : vector<32x1xi32>
    %c16_i32_13 = arith.constant 16 : i32
    %31 = vector.broadcast %c16_i32_13 : i32 to vector<32x1xi32>
    %32 = arith.cmpi sle, %28, %31 : vector<32x1xi32>
    %33 = arith.andi %30, %32 : vector<32x1xi1>
    %c-1_i32 = arith.constant -1 : i32
    %34 = vector.broadcast %c-1_i32 : i32 to vector<32x1xi32>
    %35 = arith.cmpi sge, %28, %34 : vector<32x1xi32>
    %c14_i32 = arith.constant 14 : i32
    %36 = vector.broadcast %c14_i32 : i32 to vector<32x1xi32>
    %37 = arith.cmpi sle, %28, %36 : vector<32x1xi32>
    %38 = arith.andi %35, %37 : vector<32x1xi1>
    %c1_i32_14 = arith.constant 1 : i32
    %39 = tpu.dynamic_rotate %1 by %c1_i32_14 dim 0 : vector<32x8xf32>, i32 -> vector<32x8xf32>
    %cst = arith.constant 0.000000e+00 : f32
    %40 = vector.shape_cast %33 : vector<32x1xi1> to vector<32x1xi1>
    %41 = vector.broadcast %40 : vector<32x1xi1> to vector<32x8xi1>
    %42 = vector.broadcast %cst : f32 to vector<32x8xf32>
    %43 = arith.select %41, %39, %42 : vector<32x8xi1>, vector<32x8xf32>
    %c31_i32 = arith.constant 31 : i32
    %44 = tpu.dynamic_rotate %1 by %c31_i32 dim 0 : vector<32x8xf32>, i32 -> vector<32x8xf32>
    %cst_15 = arith.constant 0.000000e+00 : f32
    %45 = vector.shape_cast %38 : vector<32x1xi1> to vector<32x1xi1>
    %46 = vector.broadcast %45 : vector<32x1xi1> to vector<32x8xi1>
    %47 = vector.broadcast %cst_15 : f32 to vector<32x8xf32>
    %48 = arith.select %46, %44, %47 : vector<32x8xi1>, vector<32x8xf32>
    %49 = tpu.concatenate %43, %1, %48 in 1 : vector<32x8xf32>, vector<32x8xf32>, vector<32x8xf32> -> vector<32x24xf32>
    %c0_16 = arith.constant 0 : index
    %c0_17 = arith.constant 0 : index
    %50 = vector.load %arg3[%c0_16, %c0_17] : memref<24x16xf32, #tpu.memory_space<vmem>>, vector<24x16xf32>
    %cst_18 = arith.constant dense<0.000000e+00> : vector<32x16xf32>
    %51 = tpu.matmul %49, %50, %cst_18 {dimension_numbers = #tpu.dot_dimension_numbers<[1], [0], [0], [1], [0, 0, 1, 1], [], []>} : vector<32x24xf32>, vector<24x16xf32>, vector<32x16xf32> -> vector<32x16xf32>
    %52 = vector.broadcast %5 : vector<1x16xf32> to vector<32x16xf32>
    %53 = arith.addf %51, %52 : vector<32x16xf32>
    %54 = vector.shape_cast %53 : vector<32x16xf32> to vector<2x16x16xf32>
    %cst_19 = arith.constant dense<0.000000e+00> : vector<2x16xf32>
    %55 = vector.multi_reduction <add>, %54, %cst_19 [1] : vector<2x16x16xf32> to vector<2x16xf32>
    %56 = arith.mulf %54, %54 : vector<2x16x16xf32>
    %cst_20 = arith.constant dense<0.000000e+00> : vector<2x16xf32>
    %57 = vector.multi_reduction <add>, %56, %cst_20 [1] : vector<2x16x16xf32> to vector<2x16xf32>
    %58 = tpu.concatenate %55, %57 in 0 : vector<2x16xf32>, vector<2x16xf32> -> vector<4x16xf32>
    %cst_21 = arith.constant dense<0.000000e+00> : vector<4x8xf32>
    %59 = tpu.matmul %58, %3, %cst_21 {dimension_numbers = #tpu.dot_dimension_numbers<[1], [1], [0], [0], [0, 0, 1, 0], [], []>} : vector<4x16xf32>, vector<8x16xf32>, vector<4x8xf32> -> vector<4x8xf32>
    %60 = vector.extract_strided_slice %59 {offsets = [0, 0], sizes = [2, 8], strides = [1, 1]} : vector<4x8xf32> to vector<2x8xf32>
    %cst_22 = arith.constant 3.125000e-02 : f32
    %61 = vector.broadcast %cst_22 : f32 to vector<2x8xf32>
    %62 = arith.mulf %60, %61 : vector<2x8xf32>
    %63 = vector.extract_strided_slice %59 {offsets = [2, 0], sizes = [2, 8], strides = [1, 1]} : vector<4x8xf32> to vector<2x8xf32>
    %cst_23 = arith.constant 3.125000e-02 : f32
    %64 = vector.broadcast %cst_23 : f32 to vector<2x8xf32>
    %65 = arith.mulf %63, %64 : vector<2x8xf32>
    %66 = arith.mulf %62, %62 : vector<2x8xf32>
    %67 = arith.subf %65, %66 : vector<2x8xf32>
    %cst_24 = arith.constant 0.000000e+00 : f32
    %68 = vector.broadcast %cst_24 : f32 to vector<2x8xf32>
    %69 = arith.maximumf %67, %68 : vector<2x8xf32>
    %cst_25 = arith.constant 9.99999974E-6 : f32
    %70 = vector.broadcast %cst_25 : f32 to vector<2x8xf32>
    %71 = arith.addf %69, %70 : vector<2x8xf32>
    %72 = math.rsqrt %71 : vector<2x8xf32>
    %73 = tpu.concatenate %62, %72 in 0 : vector<2x8xf32>, vector<2x8xf32> -> vector<4x8xf32>
    %cst_26 = arith.constant dense<0.000000e+00> : vector<4x16xf32>
    %74 = tpu.matmul %73, %3, %cst_26 {dimension_numbers = #tpu.dot_dimension_numbers<[1], [0], [0], [1], [0, 0, 1, 1], [], []>} : vector<4x8xf32>, vector<8x16xf32>, vector<4x16xf32> -> vector<4x16xf32>
    %75 = vector.extract_strided_slice %74 {offsets = [2, 0], sizes = [2, 16], strides = [1, 1]} : vector<4x16xf32> to vector<2x16xf32>
    %76 = vector.broadcast %6 : vector<1x16xf32> to vector<2x16xf32>
    %77 = arith.mulf %75, %76 : vector<2x16xf32>
    %78 = vector.extract_strided_slice %74 {offsets = [0, 0], sizes = [2, 16], strides = [1, 1]} : vector<4x16xf32> to vector<2x16xf32>
    %79 = arith.mulf %78, %77 : vector<2x16xf32>
    %80 = vector.broadcast %7 : vector<1x16xf32> to vector<2x16xf32>
    %81 = arith.subf %80, %79 : vector<2x16xf32>
    %82 = vector.shape_cast %77 : vector<2x16xf32> to vector<2x1x16xf32>
    %83 = vector.broadcast %82 : vector<2x1x16xf32> to vector<2x16x16xf32>
    %84 = arith.mulf %54, %83 : vector<2x16x16xf32>
    %85 = vector.shape_cast %81 : vector<2x16xf32> to vector<2x1x16xf32>
    %86 = vector.broadcast %85 : vector<2x1x16xf32> to vector<2x16x16xf32>
    %87 = arith.addf %84, %86 : vector<2x16x16xf32>
    %88 = vector.shape_cast %87 : vector<2x16x16xf32> to vector<32x16xf32>
    %cst_27 = arith.constant 2.000000e+01 : f32
    %89 = vector.broadcast %cst_27 : f32 to vector<32x16xf32>
    %90 = arith.minimumf %88, %89 : vector<32x16xf32>
    %91 = math.exp %90 : vector<32x16xf32>
    %cst_28 = arith.constant 1.000000e+00 : f32
    %92 = vector.broadcast %cst_28 : f32 to vector<32x16xf32>
    %93 = arith.addf %92, %91 : vector<32x16xf32>
    %cst_29 = arith.constant 1.000000e+00 : f32
    %94 = vector.broadcast %cst_29 : f32 to vector<32x16xf32>
    %95 = arith.addf %94, %91 : vector<32x16xf32>
    %96 = arith.mulf %93, %95 : vector<32x16xf32>
    %cst_30 = arith.constant 1.000000e+00 : f32
    %97 = vector.broadcast %cst_30 : f32 to vector<32x16xf32>
    %98 = arith.subf %96, %97 : vector<32x16xf32>
    %99 = arith.mulf %88, %98 : vector<32x16xf32>
    %cst_31 = arith.constant 1.000000e+00 : f32
    %100 = vector.broadcast %cst_31 : f32 to vector<32x16xf32>
    %101 = arith.addf %96, %100 : vector<32x16xf32>
    %102 = arith.divf %99, %101 : vector<32x16xf32>
    %103 = vector.shape_cast %102 : vector<32x16xf32> to vector<2x16x16xf32>
    %104 = vector.extract_strided_slice %4 {offsets = [0, 0, 0], sizes = [2, 1, 16], strides = [1, 1, 1]} : vector<2x2x16xf32> to vector<2x1x16xf32>
    %105 = vector.shape_cast %104 : vector<2x1x16xf32> to vector<2x16xf32>
    %106 = vector.shape_cast %105 : vector<2x16xf32> to vector<2x1x16xf32>
    %107 = vector.extract_strided_slice %4 {offsets = [0, 1, 0], sizes = [2, 1, 16], strides = [1, 1, 1]} : vector<2x2x16xf32> to vector<2x1x16xf32>
    %108 = vector.shape_cast %107 : vector<2x1x16xf32> to vector<2x16xf32>
    %109 = vector.shape_cast %108 : vector<2x16xf32> to vector<2x1x16xf32>
    %110 = vector.broadcast %106 : vector<2x1x16xf32> to vector<2x16x16xf32>
    %111 = arith.mulf %110, %103 : vector<2x16x16xf32>
    %112 = vector.broadcast %109 : vector<2x1x16xf32> to vector<2x16x16xf32>
    %113 = arith.addf %111, %112 : vector<2x16x16xf32>
    %114 = vector.shape_cast %113 : vector<2x16x16xf32> to vector<32x16xf32>
    %c1_i32_32 = arith.constant 1 : i32
    %115 = tpu.dynamic_rotate %114 by %c1_i32_32 dim 0 : vector<32x16xf32>, i32 -> vector<32x16xf32>
    %cst_33 = arith.constant 0.000000e+00 : f32
    %116 = vector.shape_cast %33 : vector<32x1xi1> to vector<32x1xi1>
    %117 = vector.broadcast %116 : vector<32x1xi1> to vector<32x16xi1>
    %118 = vector.broadcast %cst_33 : f32 to vector<32x16xf32>
    %119 = arith.select %117, %115, %118 : vector<32x16xi1>, vector<32x16xf32>
    %c31_i32_34 = arith.constant 31 : i32
    %120 = tpu.dynamic_rotate %114 by %c31_i32_34 dim 0 : vector<32x16xf32>, i32 -> vector<32x16xf32>
    %cst_35 = arith.constant 0.000000e+00 : f32
    %121 = vector.shape_cast %38 : vector<32x1xi1> to vector<32x1xi1>
    %122 = vector.broadcast %121 : vector<32x1xi1> to vector<32x16xi1>
    %123 = vector.broadcast %cst_35 : f32 to vector<32x16xf32>
    %124 = arith.select %122, %120, %123 : vector<32x16xi1>, vector<32x16xf32>
    %125 = tpu.concatenate %119, %114, %124 in 1 : vector<32x16xf32>, vector<32x16xf32>, vector<32x16xf32> -> vector<32x48xf32>
    %c0_36 = arith.constant 0 : index
    %c0_37 = arith.constant 0 : index
    %126 = vector.load %arg4[%c0_36, %c0_37] : memref<48x16xf32, #tpu.memory_space<vmem>>, vector<48x16xf32>
    %cst_38 = arith.constant dense<0.000000e+00> : vector<32x16xf32>
    %127 = tpu.matmul %125, %126, %cst_38 {dimension_numbers = #tpu.dot_dimension_numbers<[1], [0], [0], [1], [0, 0, 1, 1], [], []>} : vector<32x48xf32>, vector<48x16xf32>, vector<32x16xf32> -> vector<32x16xf32>
    %128 = vector.broadcast %8 : vector<1x16xf32> to vector<32x16xf32>
    %129 = arith.addf %127, %128 : vector<32x16xf32>
    %130 = vector.shape_cast %129 : vector<32x16xf32> to vector<2x16x16xf32>
    %cst_39 = arith.constant dense<0.000000e+00> : vector<2x16xf32>
    %131 = vector.multi_reduction <add>, %130, %cst_39 [1] : vector<2x16x16xf32> to vector<2x16xf32>
    %132 = arith.mulf %130, %130 : vector<2x16x16xf32>
    %cst_40 = arith.constant dense<0.000000e+00> : vector<2x16xf32>
    %133 = vector.multi_reduction <add>, %132, %cst_40 [1] : vector<2x16x16xf32> to vector<2x16xf32>
    %134 = tpu.concatenate %131, %133 in 0 : vector<2x16xf32>, vector<2x16xf32> -> vector<4x16xf32>
    %cst_41 = arith.constant dense<0.000000e+00> : vector<4x8xf32>
    %135 = tpu.matmul %134, %3, %cst_41 {dimension_numbers = #tpu.dot_dimension_numbers<[1], [1], [0], [0], [0, 0, 1, 0], [], []>} : vector<4x16xf32>, vector<8x16xf32>, vector<4x8xf32> -> vector<4x8xf32>
    %136 = vector.extract_strided_slice %135 {offsets = [0, 0], sizes = [2, 8], strides = [1, 1]} : vector<4x8xf32> to vector<2x8xf32>
    %cst_42 = arith.constant 3.125000e-02 : f32
    %137 = vector.broadcast %cst_42 : f32 to vector<2x8xf32>
    %138 = arith.mulf %136, %137 : vector<2x8xf32>
    %139 = vector.extract_strided_slice %135 {offsets = [2, 0], sizes = [2, 8], strides = [1, 1]} : vector<4x8xf32> to vector<2x8xf32>
    %cst_43 = arith.constant 3.125000e-02 : f32
    %140 = vector.broadcast %cst_43 : f32 to vector<2x8xf32>
    %141 = arith.mulf %139, %140 : vector<2x8xf32>
    %142 = arith.mulf %138, %138 : vector<2x8xf32>
    %143 = arith.subf %141, %142 : vector<2x8xf32>
    %cst_44 = arith.constant 0.000000e+00 : f32
    %144 = vector.broadcast %cst_44 : f32 to vector<2x8xf32>
    %145 = arith.maximumf %143, %144 : vector<2x8xf32>
    %cst_45 = arith.constant 9.99999974E-6 : f32
    %146 = vector.broadcast %cst_45 : f32 to vector<2x8xf32>
    %147 = arith.addf %145, %146 : vector<2x8xf32>
    %148 = math.rsqrt %147 : vector<2x8xf32>
    %149 = tpu.concatenate %138, %148 in 0 : vector<2x8xf32>, vector<2x8xf32> -> vector<4x8xf32>
    %cst_46 = arith.constant dense<0.000000e+00> : vector<4x16xf32>
    %150 = tpu.matmul %149, %3, %cst_46 {dimension_numbers = #tpu.dot_dimension_numbers<[1], [0], [0], [1], [0, 0, 1, 1], [], []>} : vector<4x8xf32>, vector<8x16xf32>, vector<4x16xf32> -> vector<4x16xf32>
    %151 = vector.extract_strided_slice %150 {offsets = [2, 0], sizes = [2, 16], strides = [1, 1]} : vector<4x16xf32> to vector<2x16xf32>
    %152 = vector.broadcast %9 : vector<1x16xf32> to vector<2x16xf32>
    %153 = arith.mulf %151, %152 : vector<2x16xf32>
    %154 = vector.extract_strided_slice %150 {offsets = [0, 0], sizes = [2, 16], strides = [1, 1]} : vector<4x16xf32> to vector<2x16xf32>
    %155 = arith.mulf %154, %153 : vector<2x16xf32>
    %156 = vector.broadcast %10 : vector<1x16xf32> to vector<2x16xf32>
    %157 = arith.subf %156, %155 : vector<2x16xf32>
    %158 = vector.shape_cast %153 : vector<2x16xf32> to vector<2x1x16xf32>
    %159 = vector.broadcast %158 : vector<2x1x16xf32> to vector<2x16x16xf32>
    %160 = arith.mulf %130, %159 : vector<2x16x16xf32>
    %161 = vector.shape_cast %157 : vector<2x16xf32> to vector<2x1x16xf32>
    %162 = vector.broadcast %161 : vector<2x1x16xf32> to vector<2x16x16xf32>
    %163 = arith.addf %160, %162 : vector<2x16x16xf32>
    %164 = vector.shape_cast %163 : vector<2x16x16xf32> to vector<32x16xf32>
    %cst_47 = arith.constant 2.000000e+01 : f32
    %165 = vector.broadcast %cst_47 : f32 to vector<32x16xf32>
    %166 = arith.minimumf %164, %165 : vector<32x16xf32>
    %167 = math.exp %166 : vector<32x16xf32>
    %cst_48 = arith.constant 1.000000e+00 : f32
    %168 = vector.broadcast %cst_48 : f32 to vector<32x16xf32>
    %169 = arith.addf %168, %167 : vector<32x16xf32>
    %cst_49 = arith.constant 1.000000e+00 : f32
    %170 = vector.broadcast %cst_49 : f32 to vector<32x16xf32>
    %171 = arith.addf %170, %167 : vector<32x16xf32>
    %172 = arith.mulf %169, %171 : vector<32x16xf32>
    %cst_50 = arith.constant 1.000000e+00 : f32
    %173 = vector.broadcast %cst_50 : f32 to vector<32x16xf32>
    %174 = arith.subf %172, %173 : vector<32x16xf32>
    %175 = arith.mulf %164, %174 : vector<32x16xf32>
    %cst_51 = arith.constant 1.000000e+00 : f32
    %176 = vector.broadcast %cst_51 : f32 to vector<32x16xf32>
    %177 = arith.addf %172, %176 : vector<32x16xf32>
    %178 = arith.divf %175, %177 : vector<32x16xf32>
    %c0_52 = arith.constant 0 : index
    %c0_53 = arith.constant 0 : index
    %179 = vector.load %arg5[%c0_52, %c0_53] : memref<8x16xf32, #tpu.memory_space<vmem>>, vector<8x16xf32>
    %cst_54 = arith.constant dense<0.000000e+00> : vector<32x16xf32>
    %180 = tpu.matmul %1, %179, %cst_54 {dimension_numbers = #tpu.dot_dimension_numbers<[1], [0], [0], [1], [0, 0, 1, 1], [], []>} : vector<32x8xf32>, vector<8x16xf32>, vector<32x16xf32> -> vector<32x16xf32>
    %181 = vector.broadcast %11 : vector<1x16xf32> to vector<32x16xf32>
    %182 = arith.addf %180, %181 : vector<32x16xf32>
    %183 = arith.addf %178, %182 : vector<32x16xf32>
    %184 = vector.shape_cast %183 : vector<32x16xf32> to vector<2x16x16xf32>
    %c0_55 = arith.constant 0 : index
    %c0_56 = arith.constant 0 : index
    %c0_57 = arith.constant 0 : index
    %185 = vector.load %arg8[%c0_55, %c0_56, %c0_57] : memref<2x16x16xf32, #tpu.memory_space<vmem>>, vector<2x16x16xf32>
    tpu.vector_store %arg8[%c0_55, %c0_56, %c0_57], %184 {strides = array<i32>} : memref<2x16x16xf32, #tpu.memory_space<vmem>>, vector<2x16x16xf32>,
    return
  }
  func.func @transform_0(%arg0: i32) -> (i32, i32, i32) {
    %c0_i32 = arith.constant 0 : i32
    %c0_i32_0 = arith.constant 0 : i32
    %c0_i32_1 = arith.constant 0 : i32
    return %arg0, %c0_i32, %c0_i32_0 : i32, i32, i32
  }
  func.func @transform_1(%arg0: i32) -> (i32, i32, i32) {
    %c0_i32 = arith.constant 0 : i32
    %c0_i32_0 = arith.constant 0 : i32
    %c0_i32_1 = arith.constant 0 : i32
    return %arg0, %c0_i32, %c0_i32_0 : i32, i32, i32
  }
  func.func @transform_2(%arg0: i32) -> (i32, i32) {
    %c0_i32 = arith.constant 0 : i32
    %c0_i32_0 = arith.constant 0 : i32
    %c0_i32_1 = arith.constant 0 : i32
    return %c0_i32, %c0_i32_0 : i32, i32
  }
  func.func @transform_3(%arg0: i32) -> (i32, i32) {
    %c0_i32 = arith.constant 0 : i32
    %c0_i32_0 = arith.constant 0 : i32
    %c0_i32_1 = arith.constant 0 : i32
    return %c0_i32, %c0_i32_0 : i32, i32
  }
  func.func @transform_4(%arg0: i32) -> (i32, i32) {
    %c0_i32 = arith.constant 0 : i32
    %c0_i32_0 = arith.constant 0 : i32
    %c0_i32_1 = arith.constant 0 : i32
    return %c0_i32, %c0_i32_0 : i32, i32
  }
  func.func @transform_5(%arg0: i32) -> (i32, i32) {
    %c0_i32 = arith.constant 0 : i32
    %c0_i32_0 = arith.constant 0 : i32
    %c0_i32_1 = arith.constant 0 : i32
    return %c0_i32, %c0_i32_0 : i32, i32
  }
  func.func @transform_6(%arg0: i32) -> (i32, i32) {
    %c0_i32 = arith.constant 0 : i32
    %c0_i32_0 = arith.constant 0 : i32
    %c0_i32_1 = arith.constant 0 : i32
    return %c0_i32, %c0_i32_0 : i32, i32
  }
  func.func @transform_7(%arg0: i32) -> (i32, i32, i32) {
    %c0_i32 = arith.constant 0 : i32
    %c0_i32_0 = arith.constant 0 : i32
    %c0_i32_1 = arith.constant 0 : i32
    return %arg0, %c0_i32, %c0_i32_0 : i32, i32, i32
  }
}

</mosaic_0001>

<bundles_post_ra>
// kernel: tpu_custom_call.1
= control target key start
LH: loop header
LB: loop body
LE: loop exit
PB: predicated region body
PF: predicated region fallthrough
CT: control target
= control target key end

     0   :  { %v35_v3 = vlaneseq  ;;  %s1474_s30 = smov 8   ;;  %s1865_s0 = inlined_call_operand.vmem [shape: f32[2,16,8], index: 0, kind: input, shape index: {}]   ;;  %s1866_s1 = inlined_call_operand.vmem [shape: f32[2,2,16], index: 1, kind: input, shape index: {}]   ;;  %s1867_s2 = inlined_call_operand.vmem [shape: f32[24,16], index: 2, kind: input, shape index: {}]   ;;  %s1868_s3 = inlined_call_operand.vmem [shape: f32[48,16], index: 3, kind: input, shape index: {}]   ;;  %s1869_s4 = inlined_call_operand.vmem [shape: f32[8,16], index: 4, kind: input, shape index: {}]   ;;  %s1870_s5 = inlined_call_operand.vmem [shape: f32[8,16], index: 5, kind: input, shape index: {}]   ;;  %s1871_s6 = inlined_call_operand.vmem [shape: f32[8,16], index: 6, kind: input, shape index: {}]   ;;  %s1872_s7 = inlined_call_operand.hbm [shape: f32[2,16,16], index: 7, kind: output, shape index: {}]  }
   0x1   :  { %v1525_v0 = vld [vmem:[%s1865_s0] sm:$0xff]  ;;  %v1530_v1 = vld [vmem:[%s1865_s0 + $0x18] sm:$0xff]  ;;  %v1535_v2 = vld [vmem:[%s1865_s0 + $0x8] sm:$0xff] }
   0x2   :  { %158 = vrot.lane.b32.xlu0 %v1525_v0, %s1474_s30  ;;  %164 = vrot.lane.b32.xlu1 %v1530_v1, %s1474_s30  ;;  %v133_v4 = vrot.slane %v1525_v0, 1  ;;  %v1545_v5 = vld [vmem:[%s1865_s0 + $0x10] sm:$0xff]  ;;  %v1550_v7 = vshrl.u32 %v35_v3, 7  ;;  %v134_v8 = vrot.slane %v1535_v2, 1  ;;  %v197_v10 = vld [vmem:[%s1867_s2 + $0x8] sm:$0xff] }
   0x3   :  { %v198_v6 = vld [vmem:[%s1867_s2 + $0x10] sm:$0xff]  ;;  %v135_v9 = vrot.slane %v1545_v5, 1 }
   0x4   :  { %1350 = vmatprep.subr.mxu0 %v198_v6 }
   0x5   :  { %1351 = vmatpush3.msra.mxu0 %v198_v6 }
   0x6   :  { %12 = vsyncpa [#allocation3], 0  ;;  %vm137_vm0 = vcmp.lt.s32.totalorder %v1550_v7, 7  ;;  %v37_v11 = vadd.s32 8, %v1550_v7  ;;  %v136_v12 = vrot.slane %v1530_v1, 1  ;;  %v39_v13 = vadd.s32 24, %v1550_v7  ;;  %1352 = vmatprep.subr.mxu0 %v197_v10  ;;  %160 = vrot.lane.b32.xlu0 %v1535_v2, %s1474_s30 }
   0x7   :  { %v196_v14 = vld [vmem:[%s1867_s2] sm:$0xff]  ;;  %v140_v15 = vsel %vm137_vm0, %v133_v4, %v134_v8  ;;  %s1475_s15 = smov 16   ;;  %v139_v17 = vsel %vm137_vm0, %v134_v8, %v135_v9  ;;  %1353 = vmatpush3.msra.mxu0 %v197_v10  ;;  %v112_v25 = vrot.slane %v1525_v0, 7  ;;  %v115_v26 = vrot.slane %v1530_v1, 7 }
   0x8   :  { %174 = vrot.lane.b32.xlu1 %v140_v15, %s1475_s15  ;;  %v51_v16 = vand.u32 15, %v37_v11  ;;  %v65_v18 = vand.u32 15, %v39_v13  ;;  %1354 = vmatprep.subr.mxu0 %v196_v14  ;;  %v141_v21 = vsel %vm137_vm0, %v136_v12, %v133_v4  ;;  %v138_v23 = vsel %vm137_vm0, %v135_v9, %v136_v12  ;;  %v1634_v56 = vld [vmem:[%s1871_s6] sm:$0xff] }
   0x9   :  { %1355 = vmatpush3.msra.mxu0 %v196_v14  ;;  %v44_v27 = vand.u32 15, %v1550_v7  ;;  %vm116_vm3 = vcmp.lt.s32.totalorder %v1550_v7, 1  ;;  %v38_v28 = vadd.s32 16, %v1550_v7  ;;  %v113_v33 = vrot.slane %v1535_v2, 7  ;;  %v1648_v59 = vld [vmem:[%s1870_s5] sm:$0xff] }
   0xa   :  { %vm1571_vm1 = vcmp.le.s32.totalorder %v51_v16, 14  ;;  %vm1575_vm2 = vcmp.le.s32.totalorder %v65_v18, 14  ;;  %162 = vrot.lane.b32.xlu0 %v1545_v5, %s1474_s30  ;;  %v120_v30 = vsel %vm116_vm3, %v115_v26, %v112_v25  ;;  %vm186_vm5 = vcmask 64512  }
   0xb   :  { %v151_v22 = vsel %vm1571_vm1, %v139_v17, 0.0  ;;  %v153_v24 = vsel %vm1575_vm2, %v141_v21, 0.0  ;;  %vm1597_vm4 = vcmp.ge.s32.totalorder %v44_v27, 1  ;;  %v58_v35 = vand.u32 15, %v38_v28 }
   0xc   :  { %176 = vrot.lane.b32.xlu1 %v151_v22, %s1475_s15  ;;  %v129_v34 = vsel %vm1597_vm4, %v120_v30, 0.0  ;;  %vm191_vm6 = vcmask 130048   ;;  %v114_v36 = vrot.slane %v1545_v5, 7  ;;  %vm203_vm7 = vcmask 195584  }
   0xd   :  { %v119_v40 = vsel %vm116_vm3, %v112_v25, %v113_v33  ;;  %vm1611_vm8 = vcmp.ge.s32.totalorder %v58_v35, 1  ;;  %v1476_v57 = vmov 0.0   ;;  %vm1477_vm9 = vmmov 0  }
   0xe   :  { %178 = vrot.lane.b32.xlu0 %v138_v23, %s1475_s15  ;;  %v118_v43 = vsel %vm116_vm3, %v113_v33, %v114_v36  ;;  %v117_v48 = vsel %vm116_vm3, %v114_v36, %v115_v26  ;;  %1362 = vmatprep.subr.mxu1 %v1476_v57  ;;  %v1643_v58 = vsub.s32 0, %v1550_v7  ;;  %vm343_vm10 = vcmask 1041409  }
   0xf   :  { %v131_v46 = vsel %vm1611_vm8, %v118_v43, 0.0  ;;  %1364 = vmatprep.mubr.msk.f32.mxu1 %vm1477_vm9, %v1476_v57  ;;  %1363 = vmatpush3.xpose.msk.msra.mxu1 %vm191_vm6, %v1634_v56  ;;  %vm348_vm11 = vcmask 1043459   ;;  %vm351_vm12 = vcmask 1041408   ;;  %vm725_vm13 = vcmask 261120  }
  0x10   :  { %180 = vrot.lane.b32.xlu1 %v153_v24, %s1475_s15  ;;  %1367 = vmatprep.subr.mxu1 %v1476_v57  ;;  %v202_v60 = vrot.slane %v1648_v59, %v1643_v58  ;;  %vm740_vm14 = vcmask 392192  }
  0x74   :  { %v159_v31 = vpop.permute.xlu0 %158  ;;  %v165_v32 = vpop.permute.xlu1 %164 }
  0x75   :  { %v187_v38 = vsel %vm186_vm5, %v129_v34, %v159_v31  ;;  %v190_v52 = vsel %vm186_vm5, %v117_v48, %v165_v32 }
  0x78   :  { %v161_v37 = vpop.permute.xlu0 %160 }
  0x79   :  { %v188_v45 = vsel %vm186_vm5, %v119_v40, %v161_v37 }
  0x7a   :  { %v175_v39 = vpop.permute.xlu1 %174 }
  0x7b   :  { %v192_v41 = vsel %vm191_vm6, %v187_v38, %v175_v39 }
  0x7c   :  { %1356 = vmatprep.mubr.msk.f32.mxu0 %vm203_vm7, %v192_v41  ;;  %v163_v44 = vpop.permute.xlu0 %162 }
  0x7d   :  { %v189_v50 = vsel %vm186_vm5, %v131_v46, %v163_v44 }
  0x7e   :  { %v177_v47 = vpop.permute.xlu1 %176 }
  0x7f   :  { %v193_v49 = vsel %vm191_vm6, %v188_v45, %v177_v47 }
  0x80   :  { %1357 = vmatmul.mubr.msk.f32.vlgmr.msra.gmra.mxu0 %vm203_vm7, %v193_v49  ;;  %v179_v51 = vpop.permute.xlu0 %178 }
  0x81   :  { %v194_v53 = vsel %vm191_vm6, %v189_v50, %v179_v51 }
  0x82   :  { %v181_v54 = vpop.permute.xlu1 %180  ;;  %1359 = vmatprep.mubr.msk.f32.mxu0 %vm203_vm7, %v194_v53 }
  0x83   :  { %v195_v55 = vsel %vm191_vm6, %v190_v52, %v181_v54 }
  0x84   :  { %1360 = vmatmul.mubr.msk.f32.gmra.mxu0 %vm203_vm7, %v195_v55 }
 0x140   :  { %v1358_v61 = vpop.f32.mrf.mxu0 }
 0x141   :  { %v1652_v62 = vadd.f32 %v1358_v61, %v202_v60 }
 0x142   :  { %v282_v63 = vpop.f32.mrf.mxu0 }
 0x143   :  { %v320_v3 = vmul.f32 %v1652_v62, %v1652_v62  ;;  %v1656_v4 = vadd.f32 %v282_v63, %v202_v60  ;;  %v302_v8 = vsel %vm191_vm6, %v1652_v62, 0.0 }
 0x144   :  { %v1361_v6 = vpop.f32.mrf.mxu0 }
 0x145   :  { %v301_v9 = vsel %vm191_vm6, %v1656_v4, 0.0  ;;  %v319_v10 = vmul.f32 %v1656_v4, %v1656_v4  ;;  %v1664_v11 = vadd.f32 %v1361_v6, %v202_v60  ;;  %v324_v14 = vsel %vm191_vm6, %v320_v3, 0.0 }
 0x146   :  { %v303_v12 = vadd.f32 %v302_v8, %v301_v9  ;;  %v292_v13 = vpop.f32.mrf.mxu0 }
 0x147   :  { %v323_v15 = vsel %vm191_vm6, %v319_v10, 0.0  ;;  %v322_v16 = vmul.f32 %v1664_v11, %v1664_v11  ;;  %v1670_v17 = vadd.f32 %v292_v13, %v202_v60  ;;  %v311_v22 = vsel %vm191_vm6, %v1664_v11, 0.0 }
 0x148   :  { %v304_v18 = vrot.slane %v303_v12, 4  ;;  %v325_v21 = vadd.f32 %v324_v14, %v323_v15  ;;  %v735_v15 = vld [vmem:[%s1868_s3 + $0x28] sm:$0xff] }
 0x149   :  { %v310_v23 = vsel %vm191_vm6, %v1670_v17, 0.0  ;;  %v321_v24 = vmul.f32 %v1670_v17, %v1670_v17  ;;  %v333_v28 = vsel %vm191_vm6, %v322_v16, 0.0  ;;  %1372 = vmatprep.subr.mxu0 %v735_v15  ;;  %v1478_v16 = vmov 1966171168  }
 0x14a   :  { %v305_v25 = vadd.f32 %v304_v18, %v303_v12  ;;  %v326_v26 = vrot.slane %v325_v21, 4  ;;  %v312_v27 = vadd.f32 %v311_v22, %v310_v23  ;;  %1373 = vmatpush3.msra.mxu0 %v735_v15  ;;  %v527_v18 = vunpack.c.l.s4 %v1478_v16 }
 0x14b   :  { %v332_v30 = vsel %vm191_vm6, %v321_v24, 0.0  ;;  %v523_v24 = vsub.s32 2, %v1550_v7 }
 0x14c   :  { %v306_v31 = vrot.slane %v305_v25, 2  ;;  %v327_v32 = vadd.f32 %v326_v26, %v325_v21  ;;  %v313_v33 = vrot.slane %v312_v27, 4  ;;  %v334_v34 = vadd.f32 %v333_v28, %v332_v30 }
 0x14d   :  { %v1699_v21 = vsub.s32 1, %v1550_v7  ;;  %v528_v22 = vunpack.c.0.s8 %v527_v18 }
 0x14e   :  { %v328_v35 = vrot.slane %v327_v32, 2  ;;  %v314_v36 = vadd.f32 %v313_v33, %v312_v27  ;;  %v335_v37 = vrot.slane %v334_v34, 4  ;;  %v307_v38 = vadd.f32 %v306_v31, %v305_v25 }
 0x14f   :  { %v515_v23 = vrot.slane %v1648_v59, %v1699_v21  ;;  %v1705_v25 = vsub.s32 %v528_v22, %v1550_v7  ;;  %v524_v31 = vrot.slane %v1648_v59, %v523_v24 }
 0x150   :  { %v329_v39 = vadd.f32 %v328_v35, %v327_v32  ;;  %v315_v40 = vrot.slane %v314_v36, 2  ;;  %v336_v41 = vadd.f32 %v335_v37, %v334_v34  ;;  %v308_v45 = vrot.slane %v307_v38, 1 }
 0x152   :  { %v316_v43 = vadd.f32 %v315_v40, %v314_v36  ;;  %v337_v44 = vrot.slane %v336_v41, 2  ;;  %v330_v48 = vrot.slane %v329_v39, 1  ;;  %v309_v51 = vadd.f32 %v308_v45, %v307_v38 }
 0x154   :  { %v317_v46 = vrot.slane %v316_v43, 1  ;;  %v338_v47 = vadd.f32 %v337_v44, %v336_v41  ;;  %v331_v52 = vadd.f32 %v330_v48, %v329_v39 }
 0x156   :  { %v318_v49 = vadd.f32 %v317_v46, %v316_v43  ;;  %v339_v50 = vrot.slane %v338_v47, 1 }
 0x158   :  { %v340_v53 = vadd.f32 %v339_v50, %v338_v47  ;;  %v344_v54 = vsel %vm343_vm10, %v318_v49, %v309_v51 }
 0x15a   :  { %v349_v55 = vsel %vm348_vm11, %v340_v53, %v331_v52 }
 0x15b   :  { %v352_v60 = vsel %vm351_vm12, %v344_v54, %v349_v55 }
 0x15c   :  { %1365 = vmatmul.mubr.msk.f32.vlgmr.msra.gmra.mxu1 %vm191_vm6, %v352_v60 }
 0x15d   :  { %1368 = vmatpush3.msra.mxu1 %v1634_v56  ;;  %1369 = vmatprep.mubr.msk.f32.mxu1 %vm1477_vm9, %v1476_v57 }
 0x15e   :  { %1390 = vmatprep.subr.mxu1 %v1476_v57 }
 0x21c   :  { %v425_v61 = vpop.f32.mrf.mxu1 }
 0x21d   :  { %v429_v63 = vmul.f32 0.03125, %v425_v61 }
 0x21e   :  { %v1366_v3 = vpop.f32.mrf.mxu1 }
 0x21f   :  { %v430_v6 = vmul.f32 %v429_v63, %v429_v63 }
 0x221   :  { %v432_v8 = vrot.slane %v430_v6, 6 }
 0x223   :  { %v434_v9 = vsub.f32 %v429_v63, %v432_v8 }
 0x225   :  { %v435_v10 = vmax.f32 %v434_v9, 0.0 }
 0x227   :  { %v436_v12 = vadd.f32 1e-05, %v435_v10 }
 0x229   :  { %1416 = vrsqrt.f32 %v436_v12 }
 0x236   :  { %v1417_v13 = vpop.eup %1416 }
 0x237   :  { %v438_v14 = vsel %vm351_vm12, %v429_v63, %v1417_v13 }
 0x238   :  { %1370 = vmatmul.mubr.msk.f32.vlgmr.msra.gmra.mxu1 %vm186_vm5, %v438_v14 }
 0x239   :  { %1391 = vmatpush3.xpose.msk.msra.mxu1 %vm191_vm6, %v1634_v56  ;;  %1392 = vmatprep.mubr.msk.f32.mxu1 %vm1477_vm9, %v1476_v57 }
 0x23a   :  { %1395 = vmatprep.subr.mxu1 %v1476_v57 }
 0x2f8   :  { %v508_v26 = vpop.f32.mrf.mxu1 }
 0x2f9   :  { %v516_v27 = vmul.f32 %v515_v23, %v508_v26 }
 0x2fa   :  { %v1371_v28 = vpop.f32.mrf.mxu1 }
 0x2fb   :  { %v518_v30 = vrot.slane %v516_v27, 2  ;;  %v532_v32 = vrot.slane %v516_v27, %v1705_v25 }
 0x2fd   :  { %v520_v33 = vmul.f32 %v518_v30, %v508_v26  ;;  %v533_v34 = vcombine.high %v532_v32, %v532_v32  ;;  %v540_v35 = vrot.slane %v532_v32, %v1705_v25 }
 0x2ff   :  { %v525_v36 = vsub.f32 %v524_v31, %v520_v33  ;;  %v547_v37 = vrot.slane %v533_v34, %v1705_v25  ;;  %v548_v38 = vcombine.high %v540_v35, %v540_v35  ;;  %v734_v31 = vld [vmem:[%s1868_s3 + $0x20] sm:$0xff]  ;;  %v733_v33 = vld [vmem:[%s1868_s3 + $0x18] sm:$0xff] }
 0x300   :  { %1374 = vmatprep.subr.mxu0 %v734_v31  ;;  %v33_v34 = vld [vmem:[%s1866_s1] sm:$0x3] }
 0x301   :  { %v549_v39 = vcombine.high %v547_v37, %v547_v37  ;;  %v571_v40 = vrot.slane %v525_v36, %v1705_v25  ;;  %v553_v41 = vrot.slane %v548_v38, %v1643_v58  ;;  %1375 = vmatpush3.msra.mxu0 %v734_v31  ;;  %v34_v37 = vld [vmem:[%s1866_s1 + $0x2] sm:$0x3] }
 0x302   :  { %1376 = vmatprep.subr.mxu0 %v733_v33 }
 0x303   :  { %v557_v43 = vrot.slane %v549_v39, %v1643_v58  ;;  %v572_v44 = vcombine.high %v571_v40, %v571_v40  ;;  %v579_v45 = vrot.slane %v571_v40, %v1705_v25  ;;  %v560_v47 = vmul.f32 %v553_v41, %v1656_v4  ;;  %1377 = vmatpush3.msra.mxu0 %v733_v33 }
 0x304   :  { %v561_v48 = vmul.f32 %v553_v41, %v1652_v62  ;;  %v644_v39 = vrot.slane %v33_v34, %v1643_v58  ;;  %v732_v41 = vld [vmem:[%s1868_s3 + $0x10] sm:$0xff] }
 0x305   :  { %v586_v46 = vrot.slane %v572_v44, %v1705_v25  ;;  %v590_v49 = vrot.slane %v579_v45, %v1643_v58  ;;  %v562_v50 = vmul.f32 %v557_v43, %v1670_v17  ;;  %v563_v51 = vmul.f32 %v557_v43, %v1664_v11  ;;  %v731_v43 = vld [vmem:[%s1868_s3 + $0x8] sm:$0xff]  ;;  %1378 = vmatprep.subr.mxu0 %v732_v41 }
 0x306   :  { %1379 = vmatpush3.msra.mxu0 %v732_v41 }
 0x307   :  { %v594_v52 = vrot.slane %v586_v46, %v1643_v58  ;;  %v597_v53 = vadd.f32 %v590_v49, %v560_v47  ;;  %v598_v54 = vadd.f32 %v590_v49, %v561_v48  ;;  %v656_v47 = vrot.slane %v33_v34, %v1699_v21  ;;  %1380 = vmatprep.subr.mxu0 %v731_v43 }
 0x308   :  { %1381 = vmatpush3.msra.mxu0 %v731_v43 }
 0x309   :  { %v600_v55 = vadd.f32 %v594_v52, %v563_v51  ;;  %v599_v60 = vadd.f32 %v594_v52, %v562_v50  ;;  %v601_v61 = vmin.f32 %v597_v53, 20.0  ;;  %v602_v63 = vmin.f32 %v598_v54, 20.0 }
 0x30a   :  { %v648_v50 = vrot.slane %v34_v37, %v1643_v58 }
 0x30b   :  { %v604_v3 = vmin.f32 %v600_v55, 20.0  ;;  %v603_v6 = vmin.f32 %v599_v60, 20.0  ;;  %v605_v8 = vmul.f32 1.442695, %v601_v61  ;;  %v607_v4 = vmul.f32 1.442695, %v602_v63 }
 0x30d   :  { %v611_v9 = vmul.f32 1.442695, %v604_v3  ;;  %v609_v62 = vmul.f32 1.442695, %v603_v6  ;;  %1418 = vpow2.f32 %v605_v8  ;;  %v660_v6 = vrot.slane %v34_v37, %v1699_v21 }
 0x30e   :  { %1420 = vpow2.f32 %v607_v4 }
 0x30f   :  { %1422 = vpow2.f32 %v611_v9 }
 0x310   :  { %1424 = vpow2.f32 %v609_v62 }
 0x31a   :  { %v1419_v17 = vpop.eup %1418 }
 0x31b   :  { %v1421_v11 = vpop.eup %1420  ;;  %v613_v10 = vadd.f32 1.0, %v1419_v17 }
 0x31c   :  { %v1423_v12 = vpop.eup %1422  ;;  %v614_v13 = vadd.f32 1.0, %v1421_v11 }
 0x31d   :  { %v1425_v14 = vpop.eup %1424  ;;  %v617_v15 = vmul.f32 %v613_v10, %v613_v10  ;;  %v616_v16 = vadd.f32 1.0, %v1423_v12 }
 0x31e   :  { %v618_v18 = vmul.f32 %v614_v13, %v614_v13  ;;  %v615_v22 = vadd.f32 1.0, %v1425_v14 }
 0x31f   :  { %v629_v23 = vadd.f32 1.0, %v617_v15  ;;  %v620_v24 = vmul.f32 %v616_v16, %v616_v16  ;;  %v1301_v32 = vadd.f32 -1.0, %v617_v15 }
 0x320   :  { %v630_v26 = vadd.f32 1.0, %v618_v18  ;;  %v619_v27 = vmul.f32 %v615_v22, %v615_v22  ;;  %v1302_v35 = vadd.f32 -1.0, %v618_v18 }
 0x321   :  { %1426 = vrcp.f32 %v629_v23  ;;  %v632_v28 = vadd.f32 1.0, %v620_v24  ;;  %v1304_v36 = vadd.f32 -1.0, %v620_v24  ;;  %v625_v40 = vmul.f32 %v1301_v32, %v597_v53 }
 0x322   :  { %1428 = vrcp.f32 %v630_v26  ;;  %v631_v30 = vadd.f32 1.0, %v619_v27  ;;  %v1303_v38 = vadd.f32 -1.0, %v619_v27  ;;  %v626_v45 = vmul.f32 %v1302_v35, %v598_v54  ;;  %v730_v54 = vld [vmem:[%s1868_s3] sm:$0xff]  ;;  %s1479_s3 = smov 32  }
 0x323   :  { %1430 = vrcp.f32 %v632_v28  ;;  %v628_v49 = vmul.f32 %v1304_v36, %v600_v55  ;;  %1382 = vmatprep.subr.mxu0 %v730_v54 }
 0x324   :  { %1432 = vrcp.f32 %v631_v30  ;;  %v627_v53 = vmul.f32 %v1303_v38, %v599_v60  ;;  %1383 = vmatpush3.msra.mxu0 %v730_v54 }
 0x32e   :  { %v1427_v44 = vpop.eup %1426 }
 0x32f   :  { %v1429_v46 = vpop.eup %1428  ;;  %v634_v48 = vmul.f32 %v1427_v44, %v625_v40 }
 0x330   :  { %v1431_v51 = vpop.eup %1430  ;;  %v636_v52 = vmul.f32 %v1429_v46, %v626_v45 }
 0x331   :  { %v1433_v61 = vpop.eup %1432  ;;  %v649_v63 = vmul.f32 %v644_v39, %v634_v48  ;;  %v640_v3 = vmul.f32 %v1431_v51, %v628_v49 }
 0x332   :  { %v650_v8 = vmul.f32 %v644_v39, %v636_v52  ;;  %v638_v4 = vmul.f32 %v1433_v61, %v627_v53 }
 0x333   :  { %v661_v55 = vadd.f32 %v656_v47, %v649_v63  ;;  %v652_v9 = vmul.f32 %v648_v50, %v640_v3 }
 0x334   :  { %v662_v62 = vadd.f32 %v656_v47, %v650_v8  ;;  %v651_v17 = vmul.f32 %v648_v50, %v638_v4  ;;  %v738_v50 = vsub.s32 3, %v1550_v7 }
 0x335   :  { %693 = vrot.lane.b32.xlu0 %v661_v55, %s1475_s15  ;;  %v664_v60 = vadd.f32 %v660_v6, %v652_v9  ;;  %v665_v11 = vrot.slane %v661_v55, 7  ;;  %v677_v13 = vrot.slane %v661_v55, 1 }
 0x336   :  { %695 = vrot.lane.b32.xlu1 %v662_v62, %s1475_s15  ;;  %v663_v21 = vadd.f32 %v660_v6, %v651_v17  ;;  %v666_v10 = vrot.slane %v662_v62, 7  ;;  %v678_v14 = vrot.slane %v662_v62, 1  ;;  %v739_v42 = vrot.slane %v1648_v59, %v738_v50 }
 0x337   :  { %v668_v12 = vrot.slane %v664_v60, 7  ;;  %v680_v24 = vrot.slane %v664_v60, 1 }
 0x338   :  { %v679_v15 = vrot.slane %v663_v21, 1  ;;  %v671_v16 = vsel %vm116_vm3, %v665_v11, %v666_v10  ;;  %v667_v18 = vrot.slane %v663_v21, 7  ;;  %v683_v28 = vsel %vm137_vm0, %v677_v13, %v678_v14 }
 0x339   :  { %697 = vrot.lane.b32.xlu0 %v663_v21, %s1475_s15  ;;  %v672_v22 = vsel %vm116_vm3, %v668_v12, %v665_v11  ;;  %v684_v31 = vsel %vm137_vm0, %v680_v24, %v677_v13 }
 0x33a   :  { %699 = vrot.lane.b32.xlu1 %v664_v60, %s1475_s15  ;;  %v682_v23 = vsel %vm137_vm0, %v678_v14, %v679_v15  ;;  %v669_v26 = vsel %vm116_vm3, %v667_v18, %v668_v12  ;;  %v670_v27 = vsel %vm116_vm3, %v666_v10, %v667_v18  ;;  %v681_v32 = vsel %vm137_vm0, %v679_v15, %v680_v24 }
 0x33b   :  { %v686_v30 = vsel %vm1571_vm1, %v682_v23, 0.0  ;;  %v688_v33 = vsel %vm1575_vm2, %v684_v31, 0.0  ;;  %v673_v19 = vsel %vm1597_vm4, %v672_v22, 0.0  ;;  %v675_v44 = vsel %vm1611_vm8, %v670_v27, 0.0 }
 0x33d   :  { %709 = vrot.lane.b32.xlu0 %v683_v28, %s1479_s3 }
 0x33e   :  { %711 = vrot.lane.b32.xlu1 %v686_v30, %s1479_s3 }
 0x341   :  { %713 = vrot.lane.b32.xlu0 %v681_v32, %s1479_s3 }
 0x342   :  { %715 = vrot.lane.b32.xlu1 %v688_v33, %s1479_s3 }
 0x3a7   :  { %v694_v34 = vpop.permute.xlu0 %693 }
 0x3a8   :  { %v696_v35 = vpop.permute.xlu1 %695  ;;  %v721_v38 = vsel %vm191_vm6, %v673_v19, %v694_v34 }
 0x3a9   :  { %v722_v40 = vsel %vm191_vm6, %v671_v16, %v696_v35 }
 0x3ab   :  { %v698_v36 = vpop.permute.xlu0 %697 }
 0x3ac   :  { %v700_v37 = vpop.permute.xlu1 %699  ;;  %v723_v29 = vsel %vm191_vm6, %v675_v44, %v698_v36 }
 0x3ad   :  { %v724_v46 = vsel %vm191_vm6, %v669_v26, %v700_v37 }
 0x3af   :  { %v710_v39 = vpop.permute.xlu0 %709 }
 0x3b0   :  { %v726_v41 = vsel %vm725_vm13, %v721_v38, %v710_v39  ;;  %v712_v20 = vpop.permute.xlu1 %711 }
 0x3b1   :  { %v727_v43 = vsel %vm725_vm13, %v722_v40, %v712_v20  ;;  %1384 = vmatprep.mubr.msk.f32.mxu0 %vm740_vm14, %v726_v41 }
 0x3b2   :  { %1385 = vmatmul.mubr.msk.f32.vlgmr.msra.gmra.mxu0 %vm740_vm14, %v727_v43 }
 0x3b3   :  { %v714_v45 = vpop.permute.xlu0 %713 }
 0x3b4   :  { %v716_v47 = vpop.permute.xlu1 %715  ;;  %v728_v48 = vsel %vm725_vm13, %v723_v29, %v714_v45 }
 0x3b5   :  { %v729_v49 = vsel %vm725_vm13, %v724_v46, %v716_v47  ;;  %1387 = vmatprep.mubr.msk.f32.mxu0 %vm740_vm14, %v728_v48 }
 0x3b6   :  { %1388 = vmatmul.mubr.msk.f32.gmra.mxu0 %vm740_vm14, %v729_v49  ;;  %v1172_v49 = vld [vmem:[%s1869_s4] sm:$0xff]  ;;  %s1480_s4 = smov [#allocation2]  }
 0x3b7   :  { %s1283_s12 = sshll.u32 %s1480_s4, 4  ;;  %s1284_s12 = int_to_ptr.vmem [resolvable:$true] %s1283_s12 }
 0x3b8   :  { %s1452_s13 = scalar_lea.vmem %s1284_s12, 512  ;;  %p1457_p1 = scmp.lt.s32.totalorder %s1284_s12, %s1284_s12 }
 0x3b9   :  { %p1453_p0 = scmp.ne.s32.totalorder %s1284_s12, %s1452_s13  ;;  %p1458_p2 = scmp.lt.s32.totalorder %s1452_s13, %s1452_s13 }
 0x3bb   :  { %p1459_p3 = por %p1458_p2, %p1457_p1 }
 0x3bd   :  { %p1460_p4 = pnand %p1459_p3, %p1453_p0 }
 0x472   :  { %v1386_v51 = vpop.f32.mrf.mxu0 }
 0x473   :  { %v1789_v52 = vadd.f32 %v1386_v51, %v739_v42 }
 0x474   :  { %v819_v53 = vpop.f32.mrf.mxu0 }
 0x475   :  { %v857_v61 = vmul.f32 %v1789_v52, %v1789_v52  ;;  %v1793_v63 = vadd.f32 %v819_v53, %v739_v42  ;;  %v839_v6 = vsel %vm191_vm6, %v1789_v52, 0.0 }
 0x476   :  { %v1389_v3 = vpop.f32.mrf.mxu0 }
 0x477   :  { %v838_v54 = vsel %vm191_vm6, %v1793_v63, 0.0  ;;  %v856_v8 = vmul.f32 %v1793_v63, %v1793_v63  ;;  %v1801_v4 = vadd.f32 %v1389_v3, %v739_v42  ;;  %v861_v62 = vsel %vm191_vm6, %v857_v61, 0.0 }
 0x478   :  { %v840_v55 = vadd.f32 %v839_v6, %v838_v54  ;;  %v829_v9 = vpop.f32.mrf.mxu0 }
 0x479   :  { %v860_v17 = vsel %vm191_vm6, %v856_v8, 0.0  ;;  %v859_v60 = vmul.f32 %v1801_v4, %v1801_v4  ;;  %v1807_v11 = vadd.f32 %v829_v9, %v739_v42  ;;  %v848_v12 = vsel %vm191_vm6, %v1801_v4, 0.0 }
 0x47a   :  { %v841_v21 = vrot.slane %v840_v55, 4  ;;  %v862_v10 = vadd.f32 %v861_v62, %v860_v17  ;;  %v1054_v9 = vsub.s32 5, %v1550_v7 }
 0x47b   :  { %v847_v13 = vsel %vm191_vm6, %v1807_v11, 0.0  ;;  %v858_v14 = vmul.f32 %v1807_v11, %v1807_v11  ;;  %v870_v22 = vsel %vm191_vm6, %v859_v60, 0.0 }
 0x47c   :  { %v842_v15 = vadd.f32 %v841_v21, %v840_v55  ;;  %v863_v16 = vrot.slane %v862_v10, 4  ;;  %v849_v18 = vadd.f32 %v848_v12, %v847_v13 }
 0x47d   :  { %v869_v23 = vsel %vm191_vm6, %v858_v14, 0.0 }
 0x47e   :  { %v843_v24 = vrot.slane %v842_v15, 2  ;;  %v864_v26 = vadd.f32 %v863_v16, %v862_v10  ;;  %v850_v27 = vrot.slane %v849_v18, 4  ;;  %v871_v28 = vadd.f32 %v870_v22, %v869_v23 }
 0x480   :  { %v865_v30 = vrot.slane %v864_v26, 2  ;;  %v851_v31 = vadd.f32 %v850_v27, %v849_v18  ;;  %v872_v32 = vrot.slane %v871_v28, 4  ;;  %v844_v33 = vadd.f32 %v843_v24, %v842_v15 }
 0x482   :  { %v866_v34 = vadd.f32 %v865_v30, %v864_v26  ;;  %v852_v35 = vrot.slane %v851_v31, 2  ;;  %v873_v36 = vadd.f32 %v872_v32, %v871_v28  ;;  %v845_v38 = vrot.slane %v844_v33, 1 }
 0x484   :  { %v853_v37 = vadd.f32 %v852_v35, %v851_v31  ;;  %v874_v19 = vrot.slane %v873_v36, 2  ;;  %v867_v39 = vrot.slane %v866_v34, 1  ;;  %v846_v44 = vadd.f32 %v845_v38, %v844_v33 }
 0x486   :  { %v854_v40 = vrot.slane %v853_v37, 1  ;;  %v875_v41 = vadd.f32 %v874_v19, %v873_v36  ;;  %v868_v29 = vadd.f32 %v867_v39, %v866_v34 }
 0x488   :  { %v855_v20 = vadd.f32 %v854_v40, %v853_v37  ;;  %v876_v43 = vrot.slane %v875_v41, 1 }
 0x48a   :  { %v877_v45 = vadd.f32 %v876_v43, %v875_v41  ;;  %v880_v46 = vsel %vm343_vm10, %v855_v20, %v846_v44 }
 0x48c   :  { %v884_v47 = vsel %vm348_vm11, %v877_v45, %v868_v29 }
 0x48d   :  { %v886_v48 = vsel %vm351_vm12, %v880_v46, %v884_v47 }
 0x48e   :  { %1393 = vmatmul.mubr.msk.f32.vlgmr.msra.gmra.mxu1 %vm191_vm6, %v886_v48 }
 0x48f   :  { %1396 = vmatpush3.msra.mxu1 %v1634_v56  ;;  %1397 = vmatprep.mubr.msk.f32.mxu1 %vm1477_vm9, %v1476_v57  ;;  %v1045_v57 = vsub.s32 4, %v1550_v7 }
 0x490   :  { %1400 = vmatprep.subr.mxu1 %v1172_v49 }
 0x491   :  { %v1046_v55 = vrot.slane %v1648_v59, %v1045_v57 }
 0x54e   :  { %v956_v50 = vpop.f32.mrf.mxu1 }
 0x54f   :  { %v960_v42 = vmul.f32 0.03125, %v956_v50 }
 0x550   :  { %v1394_v51 = vpop.f32.mrf.mxu1 }
 0x551   :  { %v961_v53 = vmul.f32 %v960_v42, %v960_v42 }
 0x553   :  { %v963_v61 = vrot.slane %v961_v53, 6 }
 0x555   :  { %v965_v3 = vsub.f32 %v960_v42, %v963_v61 }
 0x557   :  { %v966_v6 = vmax.f32 %v965_v3, 0.0  ;;  %v1175_v3 = vsub.s32 6, %v1550_v7 }
 0x559   :  { %v967_v54 = vadd.f32 1e-05, %v966_v6 }
 0x55b   :  { %1434 = vrsqrt.f32 %v967_v54 }
 0x568   :  { %v1435_v8 = vpop.eup %1434 }
 0x569   :  { %v969_v56 = vsel %vm351_vm12, %v960_v42, %v1435_v8 }
 0x56a   :  { %1398 = vmatmul.mubr.msk.f32.vlgmr.msra.gmra.mxu1 %vm186_vm5, %v969_v56  ;;  %v1176_v56 = vrot.slane %v1648_v59, %v1175_v3 }
 0x56b   :  { %1401 = vmatpush3.msra.mxu1 %v1172_v49  ;;  %1402 = vmatprep.mubr.msk.f32.mxu1 %vm186_vm5, %v1525_v0  ;;  %v1055_v0 = vrot.slane %v1648_v59, %v1054_v9 }
 0x56e   :  { %1403 = vmatmul.mubr.msk.f32.vlgmr.msra.gmra.mxu1 %vm186_vm5, %v1535_v2 }
 0x56f   :  { %1405 = vmatprep.mubr.msk.f32.mxu1 %vm186_vm5, %v1545_v5 }
 0x572   :  { %1406 = vmatmul.mubr.msk.f32.gmra.mxu1 %vm186_vm5, %v1530_v1 }
 0x62a   :  { %v1039_v62 = vpop.f32.mrf.mxu1 }
 0x62b   :  { %v1047_v17 = vmul.f32 %v1046_v55, %v1039_v62 }
 0x62c   :  { %v1399_v60 = vpop.f32.mrf.mxu1 }
 0x62d   :  { %v1049_v21 = vrot.slane %v1047_v17, 2  ;;  %v1063_v2 = vrot.slane %v1047_v17, %v1705_v25 }
 0x62e   :  { %v1404_v61 = vpop.f32.mrf.mxu1 }
 0x62f   :  { %v1051_v10 = vmul.f32 %v1049_v21, %v1039_v62  ;;  %v1064_v12 = vcombine.high %v1063_v2, %v1063_v2  ;;  %v1071_v5 = vrot.slane %v1063_v2, %v1705_v25  ;;  %v1257_v2 = vadd.f32 %v1404_v61, %v1176_v56 }
 0x630   :  { %v1251_v6 = vpop.f32.mrf.mxu1 }
 0x631   :  { %v1056_v13 = vsub.f32 %v1055_v0, %v1051_v10  ;;  %v1078_v1 = vrot.slane %v1064_v12, %v1705_v25  ;;  %v1079_v14 = vcombine.high %v1071_v5, %v1071_v5 }
 0x632   :  { %v1407_v55 = vpop.f32.mrf.mxu1 }
 0x633   :  { %v1080_v15 = vcombine.high %v1078_v1, %v1078_v1  ;;  %v1102_v16 = vrot.slane %v1056_v13, %v1705_v25  ;;  %v1084_v18 = vrot.slane %v1079_v14, %v1643_v58  ;;  %v1252_v1 = vadd.f32 %v1251_v6, %v1176_v56 }
 0x634   :  { %v1261_v12 = vpop.f32.mrf.mxu1 }
 0x635   :  { %v1088_v22 = vrot.slane %v1080_v15, %v1643_v58  ;;  %v1103_v23 = vcombine.high %v1102_v16, %v1102_v16  ;;  %v1110_v24 = vrot.slane %v1102_v16, %v1705_v25  ;;  %v1091_v27 = vmul.f32 %v1084_v18, %v1793_v63 }
 0x636   :  { %v1092_v28 = vmul.f32 %v1084_v18, %v1789_v52  ;;  %v1267_v18 = vadd.f32 %v1407_v55, %v1176_v56 }
 0x637   :  { %v1117_v26 = vrot.slane %v1103_v23, %v1705_v25  ;;  %v1121_v30 = vrot.slane %v1110_v24, %v1643_v58  ;;  %v1094_v31 = vmul.f32 %v1088_v22, %v1801_v4  ;;  %v1093_v33 = vmul.f32 %v1088_v22, %v1807_v11 }
 0x638   :  { %v1262_v23 = vadd.f32 %v1261_v12, %v1176_v56 }
 0x639   :  { %v1125_v32 = vrot.slane %v1117_v26, %v1643_v58  ;;  %v1129_v34 = vadd.f32 %v1121_v30, %v1092_v28  ;;  %v1128_v35 = vadd.f32 %v1121_v30, %v1091_v27 }
 0x63b   :  { %v1131_v36 = vadd.f32 %v1125_v32, %v1094_v31  ;;  %v1130_v37 = vadd.f32 %v1125_v32, %v1093_v33  ;;  %v1133_v19 = vmin.f32 %v1129_v34, 20.0  ;;  %v1132_v38 = vmin.f32 %v1128_v35, 20.0 }
 0x63d   :  { %v1135_v39 = vmin.f32 %v1131_v36, 20.0  ;;  %v1134_v25 = vmin.f32 %v1130_v37, 20.0  ;;  %v1138_v40 = vmul.f32 1.442695, %v1133_v19  ;;  %v1136_v63 = vmul.f32 1.442695, %v1132_v38 }
 0x63f   :  { %v1142_v41 = vmul.f32 1.442695, %v1135_v39  ;;  %v1140_v52 = vmul.f32 1.442695, %v1134_v25  ;;  %1436 = vpow2.f32 %v1138_v40 }
 0x640   :  { %1438 = vpow2.f32 %v1136_v63 }
 0x641   :  { %1440 = vpow2.f32 %v1142_v41 }
 0x642   :  { %1442 = vpow2.f32 %v1140_v52 }
 0x64c   :  { %v1437_v4 = vpop.eup %1436 }
 0x64d   :  { %v1439_v58 = vpop.eup %1438  ;;  %v1145_v20 = vadd.f32 1.0, %v1437_v4 }
 0x64e   :  { %v1441_v11 = vpop.eup %1440  ;;  %v1144_v43 = vadd.f32 1.0, %v1439_v58 }
 0x64f   :  { %v1443_v44 = vpop.eup %1442  ;;  %v1149_v29 = vmul.f32 %v1145_v20, %v1145_v20  ;;  %v1147_v45 = vadd.f32 1.0, %v1441_v11 }
 0x650   :  { %v1148_v46 = vmul.f32 %v1144_v43, %v1144_v43  ;;  %v1146_v47 = vadd.f32 1.0, %v1443_v44 }
 0x651   :  { %v1161_v48 = vadd.f32 1.0, %v1149_v29  ;;  %v1151_v49 = vmul.f32 %v1147_v45, %v1147_v45  ;;  %v1313_v54 = vadd.f32 -1.0, %v1149_v29 }
 0x652   :  { %v1160_v50 = vadd.f32 1.0, %v1148_v46  ;;  %v1150_v42 = vmul.f32 %v1146_v47, %v1146_v47  ;;  %v1312_v8 = vadd.f32 -1.0, %v1148_v46 }
 0x653   :  { %1444 = vrcp.f32 %v1161_v48  ;;  %v1163_v51 = vadd.f32 1.0, %v1151_v49  ;;  %v1315_v57 = vadd.f32 -1.0, %v1151_v49  ;;  %v1157_v62 = vmul.f32 %v1313_v54, %v1129_v34 }
 0x654   :  { %1446 = vrcp.f32 %v1160_v50  ;;  %v1162_v53 = vadd.f32 1.0, %v1150_v42  ;;  %v1314_v9 = vadd.f32 -1.0, %v1150_v42  ;;  %v1156_v60 = vmul.f32 %v1312_v8, %v1128_v35 }
 0x655   :  { %1448 = vrcp.f32 %v1163_v51  ;;  %v1159_v10 = vmul.f32 %v1315_v57, %v1131_v36 }
 0x656   :  { %1450 = vrcp.f32 %v1162_v53  ;;  %v1158_v7 = vmul.f32 %v1314_v9, %v1130_v37 }
 0x660   :  { %v1445_v17 = vpop.eup %1444 }
 0x661   :  { %v1447_v21 = vpop.eup %1446  ;;  %v1167_v0 = vmul.f32 %v1445_v17, %v1157_v62 }
 0x662   :  { %v1449_v5 = vpop.eup %1448  ;;  %v1165_v13 = vmul.f32 %v1447_v21, %v1156_v60 }
 0x663   :  { %v1451_v14 = vpop.eup %1450  ;;  %v1271_v15 = vadd.f32 %v1257_v2, %v1167_v0  ;;  %v1171_v16 = vmul.f32 %v1449_v5, %v1159_v10 }
 0x664   :  { %v1270_v59 = vadd.f32 %v1252_v1, %v1165_v13  ;;  %v1169_v22 = vmul.f32 %v1451_v14, %v1158_v7 }
 0x665   :  { %1275 = vst.msk [vmem:[#allocation2 + $0x8] sm:$0xff] %vm191_vm6, %v1271_v15  ;;  %v1273_v24 = vadd.f32 %v1267_v18, %v1171_v16 }
 0x666   :  { %1274 = vst.msk [vmem:[#allocation2] sm:$0xff] %vm191_vm6, %v1270_v59  ;;  %v1272_v26 = vadd.f32 %v1262_v23, %v1169_v22 }
 0x667   :  { %1277 = vst.msk [vmem:[#allocation2 + $0x18] sm:$0xff] %vm191_vm6, %v1273_v24 }
 0x668   :  { %1276 = vst.msk [vmem:[#allocation2 + $0x10] sm:$0xff] %vm191_vm6, %v1272_v26 }
 0x669   :  { %1463 = shalt.err (!%p1460_p4)
}
 0x66a   :  { %s1481_s0 = smov 128  }
 0x66b   :  { %1289 = dma.vmem_to_hbm [thread:$0]  %s1284_s12, 512, %s1872_s7, [#allocation3], %s1481_s0, %s1481_s0, %s1474_s30  }
 0x66c   :  { %1472 = dma.done.wait [#allocation3], 512  }
 0x66d   :  { %1473 = vsyncadd [#allocation3], 4294966784 }
 0x66e   :  { %1293 = vsyncpa [#allocation3], 1 }

// kernel: tpu_custom_call.1
= control target key start
LH: loop header
LB: loop body
LE: loop exit
PB: predicated region body
PF: predicated region fallthrough
CT: control target
= control target key end

     0   :  { %v35_v3 = vlaneseq  ;;  %s1474_s30 = smov 8   ;;  %s1865_s0 = inlined_call_operand.vmem [shape: f32[2,16,8], index: 0, kind: input, shape index: {}]   ;;  %s1866_s1 = inlined_call_operand.vmem [shape: f32[2,2,16], index: 1, kind: input, shape index: {}]   ;;  %s1867_s2 = inlined_call_operand.vmem [shape: f32[24,16], index: 2, kind: input, shape index: {}]   ;;  %s1868_s3 = inlined_call_operand.vmem [shape: f32[48,16], index: 3, kind: input, shape index: {}]   ;;  %s1869_s4 = inlined_call_operand.vmem [shape: f32[8,16], index: 4, kind: input, shape index: {}]   ;;  %s1870_s5 = inlined_call_operand.vmem [shape: f32[8,16], index: 5, kind: input, shape index: {}]   ;;  %s1871_s6 = inlined_call_operand.vmem [shape: f32[8,16], index: 6, kind: input, shape index: {}]   ;;  %s1872_s7 = inlined_call_operand.hbm [shape: f32[2,16,16], index: 7, kind: output, shape index: {}]  }
   0x1   :  { %v1525_v0 = vld [vmem:[%s1865_s0] sm:$0xff]  ;;  %v1530_v1 = vld [vmem:[%s1865_s0 + $0x18] sm:$0xff]  ;;  %v1535_v2 = vld [vmem:[%s1865_s0 + $0x8] sm:$0xff] }
   0x2   :  { %158 = vrot.lane.b32.xlu0 %v1525_v0, %s1474_s30  ;;  %164 = vrot.lane.b32.xlu1 %v1530_v1, %s1474_s30  ;;  %v133_v4 = vrot.slane %v1525_v0, 1  ;;  %v1545_v5 = vld [vmem:[%s1865_s0 + $0x10] sm:$0xff]  ;;  %v1550_v7 = vshrl.u32 %v35_v3, 7  ;;  %v134_v8 = vrot.slane %v1535_v2, 1  ;;  %v197_v10 = vld [vmem:[%s1867_s2 + $0x8] sm:$0xff] }
   0x3   :  { %v198_v6 = vld [vmem:[%s1867_s2 + $0x10] sm:$0xff]  ;;  %v135_v9 = vrot.slane %v1545_v5, 1 }
   0x4   :  { %1350 = vmatprep.subr.mxu0 %v198_v6 }
   0x5   :  { %1351 = vmatpush3.msra.mxu0 %v198_v6 }
   0x6   :  { %12 = vsyncpa [#allocation3], 0  ;;  %vm137_vm0 = vcmp.lt.s32.totalorder %v1550_v7, 7  ;;  %v37_v11 = vadd.s32 8, %v1550_v7  ;;  %v136_v12 = vrot.slane %v1530_v1, 1  ;;  %v39_v13 = vadd.s32 24, %v1550_v7  ;;  %1352 = vmatprep.subr.mxu0 %v197_v10  ;;  %160 = vrot.lane.b32.xlu0 %v1535_v2, %s1474_s30 }
   0x7   :  { %v196_v14 = vld [vmem:[%s1867_s2] sm:$0xff]  ;;  %v140_v15 = vsel %vm137_vm0, %v133_v4, %v134_v8  ;;  %s1475_s15 = smov 16   ;;  %v139_v17 = vsel %vm137_vm0, %v134_v8, %v135_v9  ;;  %1353 = vmatpush3.msra.mxu0 %v197_v10  ;;  %v112_v25 = vrot.slane %v1525_v0, 7  ;;  %v115_v26 = vrot.slane %v1530_v1, 7 }
   0x8   :  { %174 = vrot.lane.b32.xlu1 %v140_v15, %s1475_s15  ;;  %v51_v16 = vand.u32 15, %v37_v11  ;;  %v65_v18 = vand.u32 15, %v39_v13  ;;  %1354 = vmatprep.subr.mxu0 %v196_v14  ;;  %v141_v21 = vsel %vm137_vm0, %v136_v12, %v133_v4  ;;  %v138_v23 = vsel %vm137_vm0, %v135_v9, %v136_v12  ;;  %v1634_v56 = vld [vmem:[%s1871_s6] sm:$0xff] }
   0x9   :  { %1355 = vmatpush3.msra.mxu0 %v196_v14  ;;  %v44_v27 = vand.u32 15, %v1550_v7  ;;  %vm116_vm3 = vcmp.lt.s32.totalorder %v1550_v7, 1  ;;  %v38_v28 = vadd.s32 16, %v1550_v7  ;;  %v113_v33 = vrot.slane %v1535_v2, 7  ;;  %v1648_v59 = vld [vmem:[%s1870_s5] sm:$0xff] }
   0xa   :  { %vm1571_vm1 = vcmp.le.s32.totalorder %v51_v16, 14  ;;  %vm1575_vm2 = vcmp.le.s32.totalorder %v65_v18, 14  ;;  %162 = vrot.lane.b32.xlu0 %v1545_v5, %s1474_s30  ;;  %v120_v30 = vsel %vm116_vm3, %v115_v26, %v112_v25  ;;  %vm186_vm5 = vcmask 64512  }
   0xb   :  { %v151_v22 = vsel %vm1571_vm1, %v139_v17, 0.0  ;;  %v153_v24 = vsel %vm1575_vm2, %v141_v21, 0.0  ;;  %vm1597_vm4 = vcmp.ge.s32.totalorder %v44_v27, 1  ;;  %v58_v35 = vand.u32 15, %v38_v28 }
   0xc   :  { %176 = vrot.lane.b32.xlu1 %v151_v22, %s1475_s15  ;;  %v129_v34 = vsel %vm1597_vm4, %v120_v30, 0.0  ;;  %vm191_vm6 = vcmask 130048   ;;  %v114_v36 = vrot.slane %v1545_v5, 7  ;;  %vm203_vm7 = vcmask 195584  }
   0xd   :  { %v119_v40 = vsel %vm116_vm3, %v112_v25, %v113_v33  ;;  %vm1611_vm8 = vcmp.ge.s32.totalorder %v58_v35, 1  ;;  %v1476_v57 = vmov 0.0   ;;  %vm1477_vm9 = vmmov 0  }
   0xe   :  { %178 = vrot.lane.b32.xlu0 %v138_v23, %s1475_s15  ;;  %v118_v43 = vsel %vm116_vm3, %v113_v33, %v114_v36  ;;  %v117_v48 = vsel %vm116_vm3, %v114_v36, %v115_v26  ;;  %1362 = vmatprep.subr.mxu1 %v1476_v57  ;;  %v1643_v58 = vsub.s32 0, %v1550_v7  ;;  %vm343_vm10 = vcmask 1041409  }
   0xf   :  { %v131_v46 = vsel %vm1611_vm8, %v118_v43, 0.0  ;;  %1364 = vmatprep.mubr.msk.f32.mxu1 %vm1477_vm9, %v1476_v57  ;;  %1363 = vmatpush3.xpose.msk.msra.mxu1 %vm191_vm6, %v1634_v56  ;;  %vm348_vm11 = vcmask 1043459   ;;  %vm351_vm12 = vcmask 1041408   ;;  %vm725_vm13 = vcmask 261120  }
  0x10   :  { %180 = vrot.lane.b32.xlu1 %v153_v24, %s1475_s15  ;;  %1367 = vmatprep.subr.mxu1 %v1476_v57  ;;  %v202_v60 = vrot.slane %v1648_v59, %v1643_v58  ;;  %vm740_vm14 = vcmask 392192  }
  0x74   :  { %v159_v31 = vpop.permute.xlu0 %158  ;;  %v165_v32 = vpop.permute.xlu1 %164 }
  0x75   :  { %v187_v38 = vsel %vm186_vm5, %v129_v34, %v159_v31  ;;  %v190_v52 = vsel %vm186_vm5, %v117_v48, %v165_v32 }
  0x78   :  { %v161_v37 = vpop.permute.xlu0 %160 }
  0x79   :  { %v188_v45 = vsel %vm186_vm5, %v119_v40, %v161_v37 }
  0x7a   :  { %v175_v39 = vpop.permute.xlu1 %174 }
  0x7b   :  { %v192_v41 = vsel %vm191_vm6, %v187_v38, %v175_v39 }
  0x7c   :  { %1356 = vmatprep.mubr.msk.f32.mxu0 %vm203_vm7, %v192_v41  ;;  %v163_v44 = vpop.permute.xlu0 %162 }
  0x7d   :  { %v189_v50 = vsel %vm186_vm5, %v131_v46, %v163_v44 }
  0x7e   :  { %v177_v47 = vpop.permute.xlu1 %176 }
  0x7f   :  { %v193_v49 = vsel %vm191_vm6, %v188_v45, %v177_v47 }
  0x80   :  { %1357 = vmatmul.mubr.msk.f32.vlgmr.msra.gmra.mxu0 %vm203_vm7, %v193_v49  ;;  %v179_v51 = vpop.permute.xlu0 %178 }
  0x81   :  { %v194_v53 = vsel %vm191_vm6, %v189_v50, %v179_v51 }
  0x82   :  { %v181_v54 = vpop.permute.xlu1 %180  ;;  %1359 = vmatprep.mubr.msk.f32.mxu0 %vm203_vm7, %v194_v53 }
  0x83   :  { %v195_v55 = vsel %vm191_vm6, %v190_v52, %v181_v54 }
  0x84   :  { %1360 = vmatmul.mubr.msk.f32.gmra.mxu0 %vm203_vm7, %v195_v55 }
 0x140   :  { %v1358_v61 = vpop.f32.mrf.mxu0 }
 0x141   :  { %v1652_v62 = vadd.f32 %v1358_v61, %v202_v60 }
 0x142   :  { %v282_v63 = vpop.f32.mrf.mxu0 }
 0x143   :  { %v320_v3 = vmul.f32 %v1652_v62, %v1652_v62  ;;  %v1656_v4 = vadd.f32 %v282_v63, %v202_v60  ;;  %v302_v8 = vsel %vm191_vm6, %v1652_v62, 0.0 }
 0x144   :  { %v1361_v6 = vpop.f32.mrf.mxu0 }
 0x145   :  { %v301_v9 = vsel %vm191_vm6, %v1656_v4, 0.0  ;;  %v319_v10 = vmul.f32 %v1656_v4, %v1656_v4  ;;  %v1664_v11 = vadd.f32 %v1361_v6, %v202_v60  ;;  %v324_v14 = vsel %vm191_vm6, %v320_v3, 0.0 }
 0x146   :  { %v303_v12 = vadd.f32 %v302_v8, %v301_v9  ;;  %v292_v13 = vpop.f32.mrf.mxu0 }
 0x147   :  { %v323_v15 = vsel %vm191_vm6, %v319_v10, 0.0  ;;  %v322_v16 = vmul.f32 %v1664_v11, %v1664_v11  ;;  %v1670_v17 = vadd.f32 %v292_v13, %v202_v60  ;;  %v311_v22 = vsel %vm191_vm6, %v1664_v11, 0.0 }
 0x148   :  { %v304_v18 = vrot.slane %v303_v12, 4  ;;  %v325_v21 = vadd.f32 %v324_v14, %v323_v15  ;;  %v735_v15 = vld [vmem:[%s1868_s3 + $0x28] sm:$0xff] }
 0x149   :  { %v310_v23 = vsel %vm191_vm6, %v1670_v17, 0.0  ;;  %v321_v24 = vmul.f32 %v1670_v17, %v1670_v17  ;;  %v333_v28 = vsel %vm191_vm6, %v322_v16, 0.0  ;;  %1372 = vmatprep.subr.mxu0 %v735_v15  ;;  %v1478_v16 = vmov 1966171168  }
 0x14a   :  { %v305_v25 = vadd.f32 %v304_v18, %v303_v12  ;;  %v326_v26 = vrot.slane %v325_v21, 4  ;;  %v312_v27 = vadd.f32 %v311_v22, %v310_v23  ;;  %1373 = vmatpush3.msra.mxu0 %v735_v15  ;;  %v527_v18 = vunpack.c.l.s4 %v1478_v16 }
 0x14b   :  { %v332_v30 = vsel %vm191_vm6, %v321_v24, 0.0  ;;  %v523_v24 = vsub.s32 2, %v1550_v7 }
 0x14c   :  { %v306_v31 = vrot.slane %v305_v25, 2  ;;  %v327_v32 = vadd.f32 %v326_v26, %v325_v21  ;;  %v313_v33 = vrot.slane %v312_v27, 4  ;;  %v334_v34 = vadd.f32 %v333_v28, %v332_v30 }
 0x14d   :  { %v1699_v21 = vsub.s32 1, %v1550_v7  ;;  %v528_v22 = vunpack.c.0.s8 %v527_v18 }
 0x14e   :  { %v328_v35 = vrot.slane %v327_v32, 2  ;;  %v314_v36 = vadd.f32 %v313_v33, %v312_v27  ;;  %v335_v37 = vrot.slane %v334_v34, 4  ;;  %v307_v38 = vadd.f32 %v306_v31, %v305_v25 }
 0x14f   :  { %v515_v23 = vrot.slane %v1648_v59, %v1699_v21  ;;  %v1705_v25 = vsub.s32 %v528_v22, %v1550_v7  ;;  %v524_v31 = vrot.slane %v1648_v59, %v523_v24 }
 0x150   :  { %v329_v39 = vadd.f32 %v328_v35, %v327_v32  ;;  %v315_v40 = vrot.slane %v314_v36, 2  ;;  %v336_v41 = vadd.f32 %v335_v37, %v334_v34  ;;  %v308_v45 = vrot.slane %v307_v38, 1 }
 0x152   :  { %v316_v43 = vadd.f32 %v315_v40, %v314_v36  ;;  %v337_v44 = vrot.slane %v336_v41, 2  ;;  %v330_v48 = vrot.slane %v329_v39, 1  ;;  %v309_v51 = vadd.f32 %v308_v45, %v307_v38 }
 0x154   :  { %v317_v46 = vrot.slane %v316_v43, 1  ;;  %v338_v47 = vadd.f32 %v337_v44, %v336_v41  ;;  %v331_v52 = vadd.f32 %v330_v48, %v329_v39 }
 0x156   :  { %v318_v49 = vadd.f32 %v317_v46, %v316_v43  ;;  %v339_v50 = vrot.slane %v338_v47, 1 }
 0x158   :  { %v340_v53 = vadd.f32 %v339_v50, %v338_v47  ;;  %v344_v54 = vsel %vm343_vm10, %v318_v49, %v309_v51 }
 0x15a   :  { %v349_v55 = vsel %vm348_vm11, %v340_v53, %v331_v52 }
 0x15b   :  { %v352_v60 = vsel %vm351_vm12, %v344_v54, %v349_v55 }
 0x15c   :  { %1365 = vmatmul.mubr.msk.f32.vlgmr.msra.gmra.mxu1 %vm191_vm6, %v352_v60 }
 0x15d   :  { %1368 = vmatpush3.msra.mxu1 %v1634_v56  ;;  %1369 = vmatprep.mubr.msk.f32.mxu1 %vm1477_vm9, %v1476_v57 }
 0x15e   :  { %1390 = vmatprep.subr.mxu1 %v1476_v57 }
 0x21c   :  { %v425_v61 = vpop.f32.mrf.mxu1 }
 0x21d   :  { %v429_v63 = vmul.f32 0.03125, %v425_v61 }
 0x21e   :  { %v1366_v3 = vpop.f32.mrf.mxu1 }
 0x21f   :  { %v430_v6 = vmul.f32 %v429_v63, %v429_v63 }
 0x221   :  { %v432_v8 = vrot.slane %v430_v6, 6 }
 0x223   :  { %v434_v9 = vsub.f32 %v429_v63, %v432_v8 }
 0x225   :  { %v435_v10 = vmax.f32 %v434_v9, 0.0 }
 0x227   :  { %v436_v12 = vadd.f32 1e-05, %v435_v10 }
 0x229   :  { %1416 = vrsqrt.f32 %v436_v12 }
 0x236   :  { %v1417_v13 = vpop.eup %1416 }
 0x237   :  { %v438_v14 = vsel %vm351_vm12, %v429_v63, %v1417_v13 }
 0x238   :  { %1370 = vmatmul.mubr.msk.f32.vlgmr.msra.gmra.mxu1 %vm186_vm5, %v438_v14 }
 0x239   :  { %1391 = vmatpush3.xpose.msk.msra.mxu1 %vm191_vm6, %v1634_v56  ;;  %1392 = vmatprep.mubr.msk.f32.mxu1 %vm1477_vm9, %v1476_v57 }
 0x23a   :  { %1395 = vmatprep.subr.mxu1 %v1476_v57 }
 0x2f8   :  { %v508_v26 = vpop.f32.mrf.mxu1 }
 0x2f9   :  { %v516_v27 = vmul.f32 %v515_v23, %v508_v26 }
 0x2fa   :  { %v1371_v28 = vpop.f32.mrf.mxu1 }
 0x2fb   :  { %v518_v30 = vrot.slane %v516_v27, 2  ;;  %v532_v32 = vrot.slane %v516_v27, %v1705_v25 }
 0x2fd   :  { %v520_v33 = vmul.f32 %v518_v30, %v508_v26  ;;  %v533_v34 = vcombine.high %v532_v32, %v532_v32  ;;  %v540_v35 = vrot.slane %v532_v32, %v1705_v25 }
 0x2ff   :  { %v525_v36 = vsub.f32 %v524_v31, %v520_v33  ;;  %v547_v37 = vrot.slane %v533_v34, %v1705_v25  ;;  %v548_v38 = vcombine.high %v540_v35, %v540_v35  ;;  %v734_v31 = vld [vmem:[%s1868_s3 + $0x20] sm:$0xff]  ;;  %v733_v33 = vld [vmem:[%s1868_s3 + $0x18] sm:$0xff] }
 0x300   :  { %1374 = vmatprep.subr.mxu0 %v734_v31  ;;  %v33_v34 = vld [vmem:[%s1866_s1] sm:$0x3] }
 0x301   :  { %v549_v39 = vcombine.high %v547_v37, %v547_v37  ;;  %v571_v40 = vrot.slane %v525_v36, %v1705_v25  ;;  %v553_v41 = vrot.slane %v548_v38, %v1643_v58  ;;  %1375 = vmatpush3.msra.mxu0 %v734_v31  ;;  %v34_v37 = vld [vmem:[%s1866_s1 + $0x2] sm:$0x3] }
 0x302   :  { %1376 = vmatprep.subr.mxu0 %v733_v33 }
 0x303   :  { %v557_v43 = vrot.slane %v549_v39, %v1643_v58  ;;  %v572_v44 = vcombine.high %v571_v40, %v571_v40  ;;  %v579_v45 = vrot.slane %v571_v40, %v1705_v25  ;;  %v560_v47 = vmul.f32 %v553_v41, %v1656_v4  ;;  %1377 = vmatpush3.msra.mxu0 %v733_v33 }
 0x304   :  { %v561_v48 = vmul.f32 %v553_v41, %v1652_v62  ;;  %v644_v39 = vrot.slane %v33_v34, %v1643_v58  ;;  %v732_v41 = vld [vmem:[%s1868_s3 + $0x10] sm:$0xff] }
 0x305   :  { %v586_v46 = vrot.slane %v572_v44, %v1705_v25  ;;  %v590_v49 = vrot.slane %v579_v45, %v1643_v58  ;;  %v562_v50 = vmul.f32 %v557_v43, %v1670_v17  ;;  %v563_v51 = vmul.f32 %v557_v43, %v1664_v11  ;;  %v731_v43 = vld [vmem:[%s1868_s3 + $0x8] sm:$0xff]  ;;  %1378 = vmatprep.subr.mxu0 %v732_v41 }
 0x306   :  { %1379 = vmatpush3.msra.mxu0 %v732_v41 }
 0x307   :  { %v594_v52 = vrot.slane %v586_v46, %v1643_v58  ;;  %v597_v53 = vadd.f32 %v590_v49, %v560_v47  ;;  %v598_v54 = vadd.f32 %v590_v49, %v561_v48  ;;  %v656_v47 = vrot.slane %v33_v34, %v1699_v21  ;;  %1380 = vmatprep.subr.mxu0 %v731_v43 }
 0x308   :  { %1381 = vmatpush3.msra.mxu0 %v731_v43 }
 0x309   :  { %v600_v55 = vadd.f32 %v594_v52, %v563_v51  ;;  %v599_v60 = vadd.f32 %v594_v52, %v562_v50  ;;  %v601_v61 = vmin.f32 %v597_v53, 20.0  ;;  %v602_v63 = vmin.f32 %v598_v54, 20.0 }
 0x30a   :  { %v648_v50 = vrot.slane %v34_v37, %v1643_v58 }
 0x30b   :  { %v604_v3 = vmin.f32 %v600_v55, 20.0  ;;  %v603_v6 = vmin.f32 %v599_v60, 20.0  ;;  %v605_v8 = vmul.f32 1.442695, %v601_v61  ;;  %v607_v4 = vmul.f32 1.442695, %v602_v63 }
 0x30d   :  { %v611_v9 = vmul.f32 1.442695, %v604_v3  ;;  %v609_v62 = vmul.f32 1.442695, %v603_v6  ;;  %1418 = vpow2.f32 %v605_v8  ;;  %v660_v6 = vrot.slane %v34_v37, %v1699_v21 }
 0x30e   :  { %1420 = vpow2.f32 %v607_v4 }
 0x30f   :  { %1422 = vpow2.f32 %v611_v9 }
 0x310   :  { %1424 = vpow2.f32 %v609_v62 }
 0x31a   :  { %v1419_v17 = vpop.eup %1418 }
 0x31b   :  { %v1421_v11 = vpop.eup %1420  ;;  %v613_v10 = vadd.f32 1.0, %v1419_v17 }
 0x31c   :  { %v1423_v12 = vpop.eup %1422  ;;  %v614_v13 = vadd.f32 1.0, %v1421_v11 }
 0x31d   :  { %v1425_v14 = vpop.eup %1424  ;;  %v617_v15 = vmul.f32 %v613_v10, %v613_v10  ;;  %v616_v16 = vadd.f32 1.0, %v1423_v12 }
 0x31e   :  { %v618_v18 = vmul.f32 %v614_v13, %v614_v13  ;;  %v615_v22 = vadd.f32 1.0, %v1425_v14 }
 0x31f   :  { %v629_v23 = vadd.f32 1.0, %v617_v15  ;;  %v620_v24 = vmul.f32 %v616_v16, %v616_v16  ;;  %v1301_v32 = vadd.f32 -1.0, %v617_v15 }
 0x320   :  { %v630_v26 = vadd.f32 1.0, %v618_v18  ;;  %v619_v27 = vmul.f32 %v615_v22, %v615_v22  ;;  %v1302_v35 = vadd.f32 -1.0, %v618_v18 }
 0x321   :  { %1426 = vrcp.f32 %v629_v23  ;;  %v632_v28 = vadd.f32 1.0, %v620_v24  ;;  %v1304_v36 = vadd.f32 -1.0, %v620_v24  ;;  %v625_v40 = vmul.f32 %v1301_v32, %v597_v53 }
 0x322   :  { %1428 = vrcp.f32 %v630_v26  ;;  %v631_v30 = vadd.f32 1.0, %v619_v27  ;;  %v1303_v38 = vadd.f32 -1.0, %v619_v27  ;;  %v626_v45 = vmul.f32 %v1302_v35, %v598_v54  ;;  %v730_v54 = vld [vmem:[%s1868_s3] sm:$0xff]  ;;  %s1479_s3 = smov 32  }
 0x323   :  { %1430 = vrcp.f32 %v632_v28  ;;  %v628_v49 = vmul.f32 %v1304_v36, %v600_v55  ;;  %1382 = vmatprep.subr.mxu0 %v730_v54 }
 0x324   :  { %1432 = vrcp.f32 %v631_v30  ;;  %v627_v53 = vmul.f32 %v1303_v38, %v599_v60  ;;  %1383 = vmatpush3.msra.mxu0 %v730_v54 }
 0x32e   :  { %v1427_v44 = vpop.eup %1426 }
 0x32f   :  { %v1429_v46 = vpop.eup %1428  ;;  %v634_v48 = vmul.f32 %v1427_v44, %v625_v40 }
 0x330   :  { %v1431_v51 = vpop.eup %1430  ;;  %v636_v52 = vmul.f32 %v1429_v46, %v626_v45 }
 0x331   :  { %v1433_v61 = vpop.eup %1432  ;;  %v649_v63 = vmul.f32 %v644_v39, %v634_v48  ;;  %v640_v3 = vmul.f32 %v1431_v51, %v628_v49 }
 0x332   :  { %v650_v8 = vmul.f32 %v644_v39, %v636_v52  ;;  %v638_v4 = vmul.f32 %v1433_v61, %v627_v53 }
 0x333   :  { %v661_v55 = vadd.f32 %v656_v47, %v649_v63  ;;  %v652_v9 = vmul.f32 %v648_v50, %v640_v3 }
 0x334   :  { %v662_v62 = vadd.f32 %v656_v47, %v650_v8  ;;  %v651_v17 = vmul.f32 %v648_v50, %v638_v4  ;;  %v738_v50 = vsub.s32 3, %v1550_v7 }
 0x335   :  { %693 = vrot.lane.b32.xlu0 %v661_v55, %s1475_s15  ;;  %v664_v60 = vadd.f32 %v660_v6, %v652_v9  ;;  %v665_v11 = vrot.slane %v661_v55, 7  ;;  %v677_v13 = vrot.slane %v661_v55, 1 }
 0x336   :  { %695 = vrot.lane.b32.xlu1 %v662_v62, %s1475_s15  ;;  %v663_v21 = vadd.f32 %v660_v6, %v651_v17  ;;  %v666_v10 = vrot.slane %v662_v62, 7  ;;  %v678_v14 = vrot.slane %v662_v62, 1  ;;  %v739_v42 = vrot.slane %v1648_v59, %v738_v50 }
 0x337   :  { %v668_v12 = vrot.slane %v664_v60, 7  ;;  %v680_v24 = vrot.slane %v664_v60, 1 }
 0x338   :  { %v679_v15 = vrot.slane %v663_v21, 1  ;;  %v671_v16 = vsel %vm116_vm3, %v665_v11, %v666_v10  ;;  %v667_v18 = vrot.slane %v663_v21, 7  ;;  %v683_v28 = vsel %vm137_vm0, %v677_v13, %v678_v14 }
 0x339   :  { %697 = vrot.lane.b32.xlu0 %v663_v21, %s1475_s15  ;;  %v672_v22 = vsel %vm116_vm3, %v668_v12, %v665_v11  ;;  %v684_v31 = vsel %vm137_vm0, %v680_v24, %v677_v13 }
 0x33a   :  { %699 = vrot.lane.b32.xlu1 %v664_v60, %s1475_s15  ;;  %v682_v23 = vsel %vm137_vm0, %v678_v14, %v679_v15  ;;  %v669_v26 = vsel %vm116_vm3, %v667_v18, %v668_v12  ;;  %v670_v27 = vsel %vm116_vm3, %v666_v10, %v667_v18  ;;  %v681_v32 = vsel %vm137_vm0, %v679_v15, %v680_v24 }
 0x33b   :  { %v686_v30 = vsel %vm1571_vm1, %v682_v23, 0.0  ;;  %v688_v33 = vsel %vm1575_vm2, %v684_v31, 0.0  ;;  %v673_v19 = vsel %vm1597_vm4, %v672_v22, 0.0  ;;  %v675_v44 = vsel %vm1611_vm8, %v670_v27, 0.0 }
 0x33d   :  { %709 = vrot.lane.b32.xlu0 %v683_v28, %s1479_s3 }
 0x33e   :  { %711 = vrot.lane.b32.xlu1 %v686_v30, %s1479_s3 }
 0x341   :  { %713 = vrot.lane.b32.xlu0 %v681_v32, %s1479_s3 }
 0x342   :  { %715 = vrot.lane.b32.xlu1 %v688_v33, %s1479_s3 }
 0x3a7   :  { %v694_v34 = vpop.permute.xlu0 %693 }
 0x3a8   :  { %v696_v35 = vpop.permute.xlu1 %695  ;;  %v721_v38 = vsel %vm191_vm6, %v673_v19, %v694_v34 }
 0x3a9   :  { %v722_v40 = vsel %vm191_vm6, %v671_v16, %v696_v35 }
 0x3ab   :  { %v698_v36 = vpop.permute.xlu0 %697 }
 0x3ac   :  { %v700_v37 = vpop.permute.xlu1 %699  ;;  %v723_v29 = vsel %vm191_vm6, %v675_v44, %v698_v36 }
 0x3ad   :  { %v724_v46 = vsel %vm191_vm6, %v669_v26, %v700_v37 }
 0x3af   :  { %v710_v39 = vpop.permute.xlu0 %709 }
 0x3b0   :  { %v726_v41 = vsel %vm725_vm13, %v721_v38, %v710_v39  ;;  %v712_v20 = vpop.permute.xlu1 %711 }
 0x3b1   :  { %v727_v43 = vsel %vm725_vm13, %v722_v40, %v712_v20  ;;  %1384 = vmatprep.mubr.msk.f32.mxu0 %vm740_vm14, %v726_v41 }
 0x3b2   :  { %1385 = vmatmul.mubr.msk.f32.vlgmr.msra.gmra.mxu0 %vm740_vm14, %v727_v43 }
 0x3b3   :  { %v714_v45 = vpop.permute.xlu0 %713 }
 0x3b4   :  { %v716_v47 = vpop.permute.xlu1 %715  ;;  %v728_v48 = vsel %vm725_vm13, %v723_v29, %v714_v45 }
 0x3b5   :  { %v729_v49 = vsel %vm725_vm13, %v724_v46, %v716_v47  ;;  %1387 = vmatprep.mubr.msk.f32.mxu0 %vm740_vm14, %v728_v48 }
 0x3b6   :  { %1388 = vmatmul.mubr.msk.f32.gmra.mxu0 %vm740_vm14, %v729_v49  ;;  %v1172_v49 = vld [vmem:[%s1869_s4] sm:$0xff]  ;;  %s1480_s4 = smov [#allocation2]  }
 0x3b7   :  { %s1283_s12 = sshll.u32 %s1480_s4, 4  ;;  %s1284_s12 = int_to_ptr.vmem [resolvable:$true] %s1283_s12 }
 0x3b8   :  { %s1452_s13 = scalar_lea.vmem %s1284_s12, 512  ;;  %p1457_p1 = scmp.lt.s32.totalorder %s1284_s12, %s1284_s12 }
 0x3b9   :  { %p1453_p0 = scmp.ne.s32.totalorder %s1284_s12, %s1452_s13  ;;  %p1458_p2 = scmp.lt.s32.totalorder %s1452_s13, %s1452_s13 }
 0x3bb   :  { %p1459_p3 = por %p1458_p2, %p1457_p1 }
 0x3bd   :  { %p1460_p4 = pnand %p1459_p3, %p1453_p0 }
 0x472   :  { %v1386_v51 = vpop.f32.mrf.mxu0 }
 0x473   :  { %v1789_v52 = vadd.f32 %v1386_v51, %v739_v42 }
 0x474   :  { %v819_v53 = vpop.f32.mrf.mxu0 }
 0x475   :  { %v857_v61 = vmul.f32 %v1789_v52, %v1789_v52  ;;  %v1793_v63 = vadd.f32 %v819_v53, %v739_v42  ;;  %v839_v6 = vsel %vm191_vm6, %v1789_v52, 0.0 }
 0x476   :  { %v1389_v3 = vpop.f32.mrf.mxu0 }
 0x477   :  { %v838_v54 = vsel %vm191_vm6, %v1793_v63, 0.0  ;;  %v856_v8 = vmul.f32 %v1793_v63, %v1793_v63  ;;  %v1801_v4 = vadd.f32 %v1389_v3, %v739_v42  ;;  %v861_v62 = vsel %vm191_vm6, %v857_v61, 0.0 }
 0x478   :  { %v840_v55 = vadd.f32 %v839_v6, %v838_v54  ;;  %v829_v9 = vpop.f32.mrf.mxu0 }
 0x479   :  { %v860_v17 = vsel %vm191_vm6, %v856_v8, 0.0  ;;  %v859_v60 = vmul.f32 %v1801_v4, %v1801_v4  ;;  %v1807_v11 = vadd.f32 %v829_v9, %v739_v42  ;;  %v848_v12 = vsel %vm191_vm6, %v1801_v4, 0.0 }
 0x47a   :  { %v841_v21 = vrot.slane %v840_v55, 4  ;;  %v862_v10 = vadd.f32 %v861_v62, %v860_v17  ;;  %v1054_v9 = vsub.s32 5, %v1550_v7 }
 0x47b   :  { %v847_v13 = vsel %vm191_vm6, %v1807_v11, 0.0  ;;  %v858_v14 = vmul.f32 %v1807_v11, %v1807_v11  ;;  %v870_v22 = vsel %vm191_vm6, %v859_v60, 0.0 }
 0x47c   :  { %v842_v15 = vadd.f32 %v841_v21, %v840_v55  ;;  %v863_v16 = vrot.slane %v862_v10, 4  ;;  %v849_v18 = vadd.f32 %v848_v12, %v847_v13 }
 0x47d   :  { %v869_v23 = vsel %vm191_vm6, %v858_v14, 0.0 }
 0x47e   :  { %v843_v24 = vrot.slane %v842_v15, 2  ;;  %v864_v26 = vadd.f32 %v863_v16, %v862_v10  ;;  %v850_v27 = vrot.slane %v849_v18, 4  ;;  %v871_v28 = vadd.f32 %v870_v22, %v869_v23 }
 0x480   :  { %v865_v30 = vrot.slane %v864_v26, 2  ;;  %v851_v31 = vadd.f32 %v850_v27, %v849_v18  ;;  %v872_v32 = vrot.slane %v871_v28, 4  ;;  %v844_v33 = vadd.f32 %v843_v24, %v842_v15 }
 0x482   :  { %v866_v34 = vadd.f32 %v865_v30, %v864_v26  ;;  %v852_v35 = vrot.slane %v851_v31, 2  ;;  %v873_v36 = vadd.f32 %v872_v32, %v871_v28  ;;  %v845_v38 = vrot.slane %v844_v33, 1 }
 0x484   :  { %v853_v37 = vadd.f32 %v852_v35, %v851_v31  ;;  %v874_v19 = vrot.slane %v873_v36, 2  ;;  %v867_v39 = vrot.slane %v866_v34, 1  ;;  %v846_v44 = vadd.f32 %v845_v38, %v844_v33 }
 0x486   :  { %v854_v40 = vrot.slane %v853_v37, 1  ;;  %v875_v41 = vadd.f32 %v874_v19, %v873_v36  ;;  %v868_v29 = vadd.f32 %v867_v39, %v866_v34 }
 0x488   :  { %v855_v20 = vadd.f32 %v854_v40, %v853_v37  ;;  %v876_v43 = vrot.slane %v875_v41, 1 }
 0x48a   :  { %v877_v45 = vadd.f32 %v876_v43, %v875_v41  ;;  %v880_v46 = vsel %vm343_vm10, %v855_v20, %v846_v44 }
 0x48c   :  { %v884_v47 = vsel %vm348_vm11, %v877_v45, %v868_v29 }
 0x48d   :  { %v886_v48 = vsel %vm351_vm12, %v880_v46, %v884_v47 }
 0x48e   :  { %1393 = vmatmul.mubr.msk.f32.vlgmr.msra.gmra.mxu1 %vm191_vm6, %v886_v48 }
 0x48f   :  { %1396 = vmatpush3.msra.mxu1 %v1634_v56  ;;  %1397 = vmatprep.mubr.msk.f32.mxu1 %vm1477_vm9, %v1476_v57  ;;  %v1045_v57 = vsub.s32 4, %v1550_v7 }
 0x490   :  { %1400 = vmatprep.subr.mxu1 %v1172_v49 }
 0x491   :  { %v1046_v55 = vrot.slane %v1648_v59, %v1045_v57 }
 0x54e   :  { %v956_v50 = vpop.f32.mrf.mxu1 }
 0x54f   :  { %v960_v42 = vmul.f32 0.03125, %v956_v50 }
 0x550   :  { %v1394_v51 = vpop.f32.mrf.mxu1 }
 0x551   :  { %v961_v53 = vmul.f32 %v960_v42, %v960_v42 }
 0x553   :  { %v963_v61 = vrot.slane %v961_v53, 6 }
 0x555   :  { %v965_v3 = vsub.f32 %v960_v42, %v963_v61 }
 0x557   :  { %v966_v6 = vmax.f32 %v965_v3, 0.0  ;;  %v1175_v3 = vsub.s32 6, %v1550_v7 }
 0x559   :  { %v967_v54 = vadd.f32 1e-05, %v966_v6 }
 0x55b   :  { %1434 = vrsqrt.f32 %v967_v54 }
 0x568   :  { %v1435_v8 = vpop.eup %1434 }
 0x569   :  { %v969_v56 = vsel %vm351_vm12, %v960_v42, %v1435_v8 }
 0x56a   :  { %1398 = vmatmul.mubr.msk.f32.vlgmr.msra.gmra.mxu1 %vm186_vm5, %v969_v56  ;;  %v1176_v56 = vrot.slane %v1648_v59, %v1175_v3 }
 0x56b   :  { %1401 = vmatpush3.msra.mxu1 %v1172_v49  ;;  %1402 = vmatprep.mubr.msk.f32.mxu1 %vm186_vm5, %v1525_v0  ;;  %v1055_v0 = vrot.slane %v1648_v59, %v1054_v9 }
 0x56e   :  { %1403 = vmatmul.mubr.msk.f32.vlgmr.msra.gmra.mxu1 %vm186_vm5, %v1535_v2 }
 0x56f   :  { %1405 = vmatprep.mubr.msk.f32.mxu1 %vm186_vm5, %v1545_v5 }
 0x572   :  { %1406 = vmatmul.mubr.msk.f32.gmra.mxu1 %vm186_vm5, %v1530_v1 }
 0x62a   :  { %v1039_v62 = vpop.f32.mrf.mxu1 }
 0x62b   :  { %v1047_v17 = vmul.f32 %v1046_v55, %v1039_v62 }
 0x62c   :  { %v1399_v60 = vpop.f32.mrf.mxu1 }
 0x62d   :  { %v1049_v21 = vrot.slane %v1047_v17, 2  ;;  %v1063_v2 = vrot.slane %v1047_v17, %v1705_v25 }
 0x62e   :  { %v1404_v61 = vpop.f32.mrf.mxu1 }
 0x62f   :  { %v1051_v10 = vmul.f32 %v1049_v21, %v1039_v62  ;;  %v1064_v12 = vcombine.high %v1063_v2, %v1063_v2  ;;  %v1071_v5 = vrot.slane %v1063_v2, %v1705_v25  ;;  %v1257_v2 = vadd.f32 %v1404_v61, %v1176_v56 }
 0x630   :  { %v1251_v6 = vpop.f32.mrf.mxu1 }
 0x631   :  { %v1056_v13 = vsub.f32 %v1055_v0, %v1051_v10  ;;  %v1078_v1 = vrot.slane %v1064_v12, %v1705_v25  ;;  %v1079_v14 = vcombine.high %v1071_v5, %v1071_v5 }
 0x632   :  { %v1407_v55 = vpop.f32.mrf.mxu1 }
 0x633   :  { %v1080_v15 = vcombine.high %v1078_v1, %v1078_v1  ;;  %v1102_v16 = vrot.slane %v1056_v13, %v1705_v25  ;;  %v1084_v18 = vrot.slane %v1079_v14, %v1643_v58  ;;  %v1252_v1 = vadd.f32 %v1251_v6, %v1176_v56 }
 0x634   :  { %v1261_v12 = vpop.f32.mrf.mxu1 }
 0x635   :  { %v1088_v22 = vrot.slane %v1080_v15, %v1643_v58  ;;  %v1103_v23 = vcombine.high %v1102_v16, %v1102_v16  ;;  %v1110_v24 = vrot.slane %v1102_v16, %v1705_v25  ;;  %v1091_v27 = vmul.f32 %v1084_v18, %v1793_v63 }
 0x636   :  { %v1092_v28 = vmul.f32 %v1084_v18, %v1789_v52  ;;  %v1267_v18 = vadd.f32 %v1407_v55, %v1176_v56 }
 0x637   :  { %v1117_v26 = vrot.slane %v1103_v23, %v1705_v25  ;;  %v1121_v30 = vrot.slane %v1110_v24, %v1643_v58  ;;  %v1094_v31 = vmul.f32 %v1088_v22, %v1801_v4  ;;  %v1093_v33 = vmul.f32 %v1088_v22, %v1807_v11 }
 0x638   :  { %v1262_v23 = vadd.f32 %v1261_v12, %v1176_v56 }
 0x639   :  { %v1125_v32 = vrot.slane %v1117_v26, %v1643_v58  ;;  %v1129_v34 = vadd.f32 %v1121_v30, %v1092_v28  ;;  %v1128_v35 = vadd.f32 %v1121_v30, %v1091_v27 }
 0x63b   :  { %v1131_v36 = vadd.f32 %v1125_v32, %v1094_v31  ;;  %v1130_v37 = vadd.f32 %v1125_v32, %v1093_v33  ;;  %v1133_v19 = vmin.f32 %v1129_v34, 20.0  ;;  %v1132_v38 = vmin.f32 %v1128_v35, 20.0 }
 0x63d   :  { %v1135_v39 = vmin.f32 %v1131_v36, 20.0  ;;  %v1134_v25 = vmin.f32 %v1130_v37, 20.0  ;;  %v1138_v40 = vmul.f32 1.442695, %v1133_v19  ;;  %v1136_v63 = vmul.f32 1.442695, %v1132_v38 }
 0x63f   :  { %v1142_v41 = vmul.f32 1.442695, %v1135_v39  ;;  %v1140_v52 = vmul.f32 1.442695, %v1134_v25  ;;  %1436 = vpow2.f32 %v1138_v40 }
 0x640   :  { %1438 = vpow2.f32 %v1136_v63 }
 0x641   :  { %1440 = vpow2.f32 %v1142_v41 }
 0x642   :  { %1442 = vpow2.f32 %v1140_v52 }
 0x64c   :  { %v1437_v4 = vpop.eup %1436 }
 0x64d   :  { %v1439_v58 = vpop.eup %1438  ;;  %v1145_v20 = vadd.f32 1.0, %v1437_v4 }
 0x64e   :  { %v1441_v11 = vpop.eup %1440  ;;  %v1144_v43 = vadd.f32 1.0, %v1439_v58 }
 0x64f   :  { %v1443_v44 = vpop.eup %1442  ;;  %v1149_v29 = vmul.f32 %v1145_v20, %v1145_v20  ;;  %v1147_v45 = vadd.f32 1.0, %v1441_v11 }
 0x650   :  { %v1148_v46 = vmul.f32 %v1144_v43, %v1144_v43  ;;  %v1146_v47 = vadd.f32 1.0, %v1443_v44 }
 0x651   :  { %v1161_v48 = vadd.f32 1.0, %v1149_v29  ;;  %v1151_v49 = vmul.f32 %v1147_v45, %v1147_v45  ;;  %v1313_v54 = vadd.f32 -1.0, %v1149_v29 }
 0x652   :  { %v1160_v50 = vadd.f32 1.0, %v1148_v46  ;;  %v1150_v42 = vmul.f32 %v1146_v47, %v1146_v47  ;;  %v1312_v8 = vadd.f32 -1.0, %v1148_v46 }
 0x653   :  { %1444 = vrcp.f32 %v1161_v48  ;;  %v1163_v51 = vadd.f32 1.0, %v1151_v49  ;;  %v1315_v57 = vadd.f32 -1.0, %v1151_v49  ;;  %v1157_v62 = vmul.f32 %v1313_v54, %v1129_v34 }
 0x654   :  { %1446 = vrcp.f32 %v1160_v50  ;;  %v1162_v53 = vadd.f32 1.0, %v1150_v42  ;;  %v1314_v9 = vadd.f32 -1.0, %v1150_v42  ;;  %v1156_v60 = vmul.f32 %v1312_v8, %v1128_v35 }
 0x655   :  { %1448 = vrcp.f32 %v1163_v51  ;;  %v1159_v10 = vmul.f32 %v1315_v57, %v1131_v36 }
 0x656   :  { %1450 = vrcp.f32 %v1162_v53  ;;  %v1158_v7 = vmul.f32 %v1314_v9, %v1130_v37 }
 0x660   :  { %v1445_v17 = vpop.eup %1444 }
 0x661   :  { %v1447_v21 = vpop.eup %1446  ;;  %v1167_v0 = vmul.f32 %v1445_v17, %v1157_v62 }
 0x662   :  { %v1449_v5 = vpop.eup %1448  ;;  %v1165_v13 = vmul.f32 %v1447_v21, %v1156_v60 }
 0x663   :  { %v1451_v14 = vpop.eup %1450  ;;  %v1271_v15 = vadd.f32 %v1257_v2, %v1167_v0  ;;  %v1171_v16 = vmul.f32 %v1449_v5, %v1159_v10 }
 0x664   :  { %v1270_v59 = vadd.f32 %v1252_v1, %v1165_v13  ;;  %v1169_v22 = vmul.f32 %v1451_v14, %v1158_v7 }
 0x665   :  { %1275 = vst.msk [vmem:[#allocation2 + $0x8] sm:$0xff] %vm191_vm6, %v1271_v15  ;;  %v1273_v24 = vadd.f32 %v1267_v18, %v1171_v16 }
 0x666   :  { %1274 = vst.msk [vmem:[#allocation2] sm:$0xff] %vm191_vm6, %v1270_v59  ;;  %v1272_v26 = vadd.f32 %v1262_v23, %v1169_v22 }
 0x667   :  { %1277 = vst.msk [vmem:[#allocation2 + $0x18] sm:$0xff] %vm191_vm6, %v1273_v24 }
 0x668   :  { %1276 = vst.msk [vmem:[#allocation2 + $0x10] sm:$0xff] %vm191_vm6, %v1272_v26 }
 0x669   :  { %1463 = shalt.err (!%p1460_p4)
}
 0x66a   :  { %s1481_s0 = smov 128  }
 0x66b   :  { %1289 = dma.vmem_to_hbm [thread:$0]  %s1284_s12, 512, %s1872_s7, [#allocation3], %s1481_s0, %s1481_s0, %s1474_s30  }
 0x66c   :  { %1472 = dma.done.wait [#allocation3], 512  }
 0x66d   :  { %1473 = vsyncadd [#allocation3], 4294966784 }
 0x66e   :  { %1293 = vsyncpa [#allocation3], 1 }

</bundles_post_ra>
